<compile_context>
chip_gen: v6e
topology: v6e:2x2x1
jax: 0.10.0
libtpu: 0.0.40
codegen_flags: <defaults>
</compile_context>

<pallas_src>
import functools

import jax
import jax.numpy as jnp
from jax.experimental import pallas as pl
from jax.experimental.pallas import tpu as pltpu

# Small synthetic "BERT" config (the real module uses hidden=768; we scale down).
BATCH, SEQ = 2, 8
HIDDEN, HEADS, FF = 128, 2, 256
HEAD_DIM = HIDDEN // HEADS
LAYERS = 2
VOCAB = 64
NUM_REL = 8            # stand-in for len(rel_map)
NUM_REL_PAD = 128      # classifier output padded to a full lane width (lane-dense store)
OUT_ROWS = 8           # classifier output padded to a full sublane tile (dense store)
LN_EPS = 1e-12


# ---------------- Fused Pallas kernel (whole forward) ----------------

def _rc_forward_kernel(ids_ref, wemb_ref, pos_ref, tok_ref, eg_ref, eb_ref,
                       wqkv_ref, bqkv_ref, wo_ref, bo_ref,
                       ln1g_ref, ln1b_ref, w1_ref, b1_ref, w2_ref, b2_ref,
                       ln2g_ref, ln2b_ref, fcw_ref, fcb_ref,
                       o_ref,
                       *, batch, seq, heads, head_dim, layers, out_rows):
    D = heads * head_dim
    BS = batch * seq
    vocab = wemb_ref.shape[0]

    def layer_norm(h, g, b):
        mu = jnp.mean(h, axis=-1, keepdims=True)
        xc = h - mu
        var = jnp.mean(xc * xc, axis=-1, keepdims=True)
        return xc * jax.lax.rsqrt(var + LN_EPS) * g + b

    # --- Embeddings (word gather as a one-hot bf16 MXU matmul) + LayerNorm ---
    ids = ids_ref[...]                                               # [BS, 1] int32
    iota = jax.lax.broadcasted_iota(jnp.int32, (BS, vocab), 1)
    onehot = jnp.where(ids == iota, 1.0, 0.0).astype(jnp.bfloat16)   # [BS, VOCAB]
    word = jnp.dot(onehot, wemb_ref[...], preferred_element_type=jnp.float32)
    pos = jnp.concatenate([pos_ref[...]] * batch, axis=0)            # [BS, D]
    x = layer_norm(word + pos + tok_ref[0:1, :], eg_ref[...], eb_ref[...])

    for l in range(layers):
        # --- Self-attention block ---
        # Fused Q|K|V projection: one [BS, D] x [D, 3D] matmul, bf16 operands, f32 acc.
        # (attention scale 1/sqrt(head_dim) is pre-folded into the Q weights/bias.)
        qkv = jnp.dot(x.astype(jnp.bfloat16), wqkv_ref[l],
                      preferred_element_type=jnp.float32) + bqkv_ref[l]
        q = qkv[:, 0 * D:1 * D].astype(jnp.bfloat16)
        k = qkv[:, 1 * D:2 * D].astype(jnp.bfloat16)
        v = qkv[:, 2 * D:3 * D].astype(jnp.bfloat16)

        # Scores for all (batch, head) pairs, stacked along sublanes so the softmax
        # reductions run once over a single [B*H*seq, seq] slab.
        s_blocks = []
        for b in range(batch):
            r0 = b * seq
            for h in range(heads):
                c0 = h * head_dim
                s_blocks.append(jax.lax.dot_general(
                    q[r0:r0 + seq, c0:c0 + head_dim],
                    k[r0:r0 + seq, c0:c0 + head_dim],
                    (((1,), (1,)), ((), ())),
                    preferred_element_type=jnp.float32))
        s = jnp.concatenate(s_blocks, axis=0)                        # [B*H*seq, seq]
        # TODO(synk): no padding attention_mask applied (synthetic inputs are unpadded).
        m = jnp.max(s, axis=-1, keepdims=True)
        p = jnp.exp(s - m)
        p = p * pl.reciprocal(jnp.sum(p, axis=-1, keepdims=True), approx=True)
        p = p.astype(jnp.bfloat16)

        # Context: per-head p @ v kept in vregs and reassembled with concatenates
        # (no VMEM scratch round trip, no masked partial stores).
        ctx_rows = []
        for b in range(batch):
            r0 = b * seq
            ctx_heads = []
            for h in range(heads):
                c0 = h * head_dim
                idx = b * heads + h
                ctx_heads.append(jnp.dot(
                    p[idx * seq:(idx + 1) * seq, :],
                    v[r0:r0 + seq, c0:c0 + head_dim],
                    preferred_element_type=jnp.float32))
            ctx_rows.append(jnp.concatenate(ctx_heads, axis=1))      # [seq, D]
        ctx = jnp.concatenate(ctx_rows, axis=0)                      # [BS, D]

        attn_out = jnp.dot(ctx.astype(jnp.bfloat16), wo_ref[l],
                           preferred_element_type=jnp.float32) + bo_ref[l]
        x = layer_norm(attn_out + x, ln1g_ref[l], ln1b_ref[l])

        # --- Feed-forward block ---
        hmid = jnp.dot(x.astype(jnp.bfloat16), w1_ref[l],
                       preferred_element_type=jnp.float32) + b1_ref[l]
        # TODO(synk): HF BERT uses exact erf-GELU; tanh approximation used for EUP lowering.
        hmid = jax.nn.gelu(hmid, approximate=True)
        ffn_out = jnp.dot(hmid.astype(jnp.bfloat16), w2_ref[l],
                          preferred_element_type=jnp.float32) + b2_ref[l]
        x = layer_norm(ffn_out + x, ln2g_ref[l], ln2b_ref[l])

    # --- Classifier + sigmoid on the [CLS] rows only ---
    # Gather the B [CLS] rows into a dense [out_rows, D] slab (zero-padded rows) so the
    # fc matmul, sigmoid and the single (8,128) output store are fully lane/sublane dense.
    cls_rows = [x[b * seq:b * seq + 1, :] for b in range(batch)]
    if out_rows > batch:
        cls_rows.append(jnp.zeros((out_rows - batch, D), jnp.float32))
    x_cls = jnp.concatenate(cls_rows, axis=0)                        # [out_rows, D]
    logits = jnp.dot(x_cls.astype(jnp.bfloat16), fcw_ref[...],
                     preferred_element_type=jnp.float32) + fcb_ref[...]
    o_ref[...] = jax.nn.sigmoid(logits)


def _vmem_full(shape):
    """Full-array VMEM block for a grid=(1,) call."""
    zeros = (0,) * len(shape)
    return pl.BlockSpec(shape, lambda i, _z=zeros: _z)


# ---------------- Parameters (deterministic, synthetic) ----------------

def init_params(key):
    keys = iter(jax.random.split(key, 64))

    def nrm(shape, scale=0.02):
        return (scale * jax.random.normal(next(keys), shape)).astype(jnp.float32)

    def nrm_bf16(shape, scale=0.02):
        # Matmul weights stored in bf16 (MXU operands); accumulation stays f32.
        return nrm(shape, scale).astype(jnp.bfloat16)

    # Fold the 1/sqrt(head_dim) attention scale into the Q third of the fused QKV
    # projection (mathematical identity; zero runtime cost).
    attn_scale = 1.0 / (HEAD_DIM ** 0.5)
    wqkv = nrm((LAYERS, HIDDEN, 3 * HIDDEN))
    wqkv = wqkv.at[:, :, :HIDDEN].multiply(attn_scale)
    bqkv = jnp.zeros((LAYERS, 1, 3 * HIDDEN), jnp.float32)
    bqkv = bqkv.at[:, :, :HIDDEN].multiply(attn_scale)   # no-op for zero bias; kept for fidelity

    fc_w = jnp.zeros((HIDDEN, NUM_REL_PAD), jnp.float32)
    fc_w = fc_w.at[:, :NUM_REL].set(nrm((HIDDEN, NUM_REL)))

    return {
        "word_emb": nrm_bf16((VOCAB, HIDDEN)),           # bf16 MXU operand (one-hot gather)
        "pos_emb": nrm((SEQ, HIDDEN)),
        "tok_emb": nrm((2, HIDDEN)),
        "emb_ln_g": jnp.ones((1, HIDDEN), jnp.float32),
        "emb_ln_b": jnp.zeros((1, HIDDEN), jnp.float32),
        # Per-layer weights stacked along a leading layer axis; QKV fused to [D, 3D].
        "wqkv": wqkv.astype(jnp.bfloat16),
        "bqkv": bqkv,
        "wo": nrm_bf16((LAYERS, HIDDEN, HIDDEN)),
        "bo": jnp.zeros((LAYERS, 1, HIDDEN), jnp.float32),
        "ln1_g": jnp.ones((LAYERS, 1, HIDDEN), jnp.float32),
        "ln1_b": jnp.zeros((LAYERS, 1, HIDDEN), jnp.float32),
        "w1": nrm_bf16((LAYERS, HIDDEN, FF)),
        "b1": jnp.zeros((LAYERS, 1, FF), jnp.float32),
        "w2": nrm_bf16((LAYERS, FF, HIDDEN)),
        "b2": jnp.zeros((LAYERS, 1, HIDDEN), jnp.float32),
        "ln2_g": jnp.ones((LAYERS, 1, HIDDEN), jnp.float32),
        "ln2_b": jnp.zeros((LAYERS, 1, HIDDEN), jnp.float32),
        "fc_w": fc_w.astype(jnp.bfloat16),               # padded to 128 output lanes
        "fc_b": jnp.zeros((1, NUM_REL_PAD), jnp.float32),
    }


# ---------------- Forward pass (RCModel.forward) ----------------

def rc_model_forward(params, input_ids):
    B, S = input_ids.shape

    # Token ids as a small int32 VMEM column; the embedding gather itself happens
    # inside the kernel as a one-hot MXU matmul (single pallas_call end-to-end).
    ids = input_ids.reshape(B * S, 1).astype(jnp.int32)

    kernel = functools.partial(
        _rc_forward_kernel,
        batch=B, seq=S, heads=HEADS, head_dim=HEAD_DIM, layers=LAYERS,
        out_rows=OUT_ROWS)

    operands = (ids,
                params["word_emb"], params["pos_emb"], params["tok_emb"],
                params["emb_ln_g"], params["emb_ln_b"],
                params["wqkv"], params["bqkv"], params["wo"], params["bo"],
                params["ln1_g"], params["ln1_b"],
                params["w1"], params["b1"], params["w2"], params["b2"],
                params["ln2_g"], params["ln2_b"],
                params["fc_w"], params["fc_b"])

    out_pad = pl.pallas_call(
        kernel,
        out_shape=jax.ShapeDtypeStruct((OUT_ROWS, NUM_REL_PAD), jnp.float32),
        grid=(1,),
        in_specs=[_vmem_full(op.shape) for op in operands],
        out_specs=_vmem_full((OUT_ROWS, NUM_REL_PAD)),
        compiler_params=pltpu.CompilerParams(
            dimension_semantics=("arbitrary",)),
    )(*operands)

    return out_pad[:B, :NUM_REL]          # sigmoid(fc(z[:, 0, :]))  -> [B, NUM_REL]


if __name__ == "__main__":
    key = jax.random.PRNGKey(0)
    pkey, xkey = jax.random.split(key)
    params = init_params(pkey)
    input_ids = jax.random.randint(xkey, (BATCH, SEQ), 0, VOCAB, dtype=jnp.int32)

    out = jax.jit(rc_model_forward)(params, input_ids)
    out = jax.block_until_ready(out)

    assert out.shape == (BATCH, NUM_REL)
    assert bool(jnp.all(jnp.isfinite(out)))
    assert bool(jnp.all((out >= 0.0) & (out <= 1.0)))
    print("KERNEL_OK")
</pallas_src>

<mosaic_0001>
module attributes {stable_mosaic.version = 11 : i64} {
  func.func @_rc_forward_kernel(%arg0: i32, %arg1: memref<16x1xi32, #tpu.memory_space<vmem>>, %arg2: memref<64x128xbf16, #tpu.memory_space<vmem>>, %arg3: memref<8x128xf32, #tpu.memory_space<vmem>>, %arg4: memref<2x128xf32, #tpu.memory_space<vmem>>, %arg5: memref<1x128xf32, #tpu.memory_space<vmem>>, %arg6: memref<1x128xf32, #tpu.memory_space<vmem>>, %arg7: memref<2x128x384xbf16, #tpu.memory_space<vmem>>, %arg8: memref<2x1x384xf32, #tpu.memory_space<vmem>>, %arg9: memref<2x128x128xbf16, #tpu.memory_space<vmem>>, %arg10: memref<2x1x128xf32, #tpu.memory_space<vmem>>, %arg11: memref<2x1x128xf32, #tpu.memory_space<vmem>>, %arg12: memref<2x1x128xf32, #tpu.memory_space<vmem>>, %arg13: memref<2x128x256xbf16, #tpu.memory_space<vmem>>, %arg14: memref<2x1x256xf32, #tpu.memory_space<vmem>>, %arg15: memref<2x256x128xbf16, #tpu.memory_space<vmem>>, %arg16: memref<2x1x128xf32, #tpu.memory_space<vmem>>, %arg17: memref<2x1x128xf32, #tpu.memory_space<vmem>>, %arg18: memref<2x1x128xf32, #tpu.memory_space<vmem>>, %arg19: memref<128x128xbf16, #tpu.memory_space<vmem>>, %arg20: memref<1x128xf32, #tpu.memory_space<vmem>>, %arg21: memref<8x128xf32, #tpu.memory_space<vmem>>) attributes {dimension_semantics = [#tpu.dimension_semantics<arbitrary>], iteration_bounds = array<i64: 1>, scalar_prefetch = 0 : i64, scratch_operands = 0 : i64, tpu.core_type = #tpu.core_type<tc>, window_params = [{pipeline_mode = #tpu.pipeline_mode<synchronous>, transform_indices = @transform_0, window_bounds = array<i64: 16, 1>}, {pipeline_mode = #tpu.pipeline_mode<synchronous>, transform_indices = @transform_1, window_bounds = array<i64: 64, 128>}, {pipeline_mode = #tpu.pipeline_mode<synchronous>, transform_indices = @transform_2, window_bounds = array<i64: 8, 128>}, {pipeline_mode = #tpu.pipeline_mode<synchronous>, transform_indices = @transform_3, window_bounds = array<i64: 2, 128>}, {pipeline_mode = #tpu.pipeline_mode<synchronous>, transform_indices = @transform_4, window_bounds = array<i64: 1, 128>}, {pipeline_mode = #tpu.pipeline_mode<synchronous>, transform_indices = @transform_5, window_bounds = array<i64: 1, 128>}, {pipeline_mode = #tpu.pipeline_mode<synchronous>, transform_indices = @transform_6, window_bounds = array<i64: 2, 128, 384>}, {pipeline_mode = #tpu.pipeline_mode<synchronous>, transform_indices = @transform_7, window_bounds = array<i64: 2, 1, 384>}, {pipeline_mode = #tpu.pipeline_mode<synchronous>, transform_indices = @transform_8, window_bounds = array<i64: 2, 128, 128>}, {pipeline_mode = #tpu.pipeline_mode<synchronous>, transform_indices = @transform_9, window_bounds = array<i64: 2, 1, 128>}, {pipeline_mode = #tpu.pipeline_mode<synchronous>, transform_indices = @transform_10, window_bounds = array<i64: 2, 1, 128>}, {pipeline_mode = #tpu.pipeline_mode<synchronous>, transform_indices = @transform_11, window_bounds = array<i64: 2, 1, 128>}, {pipeline_mode = #tpu.pipeline_mode<synchronous>, transform_indices = @transform_12, window_bounds = array<i64: 2, 128, 256>}, {pipeline_mode = #tpu.pipeline_mode<synchronous>, transform_indices = @transform_13, window_bounds = array<i64: 2, 1, 256>}, {pipeline_mode = #tpu.pipeline_mode<synchronous>, transform_indices = @transform_14, window_bounds = array<i64: 2, 256, 128>}, {pipeline_mode = #tpu.pipeline_mode<synchronous>, transform_indices = @transform_15, window_bounds = array<i64: 2, 1, 128>}, {pipeline_mode = #tpu.pipeline_mode<synchronous>, transform_indices = @transform_16, window_bounds = array<i64: 2, 1, 128>}, {pipeline_mode = #tpu.pipeline_mode<synchronous>, transform_indices = @transform_17, window_bounds = array<i64: 2, 1, 128>}, {pipeline_mode = #tpu.pipeline_mode<synchronous>, transform_indices = @transform_18, window_bounds = array<i64: 128, 128>}, {pipeline_mode = #tpu.pipeline_mode<synchronous>, transform_indices = @transform_19, window_bounds = array<i64: 1, 128>}, {pipeline_mode = #tpu.pipeline_mode<synchronous>, transform_indices = @transform_20, window_bounds = array<i64: 8, 128>}]} {
    %c0 = arith.constant 0 : index
    %c0_0 = arith.constant 0 : index
    %0 = vector.load %arg1[%c0, %c0_0] : memref<16x1xi32, #tpu.memory_space<vmem>>, vector<16x1xi32>
    %1 = tpu.iota {dimensions = array<i32: 1>} : vector<16x64xi32>
    %2 = vector.broadcast %0 : vector<16x1xi32> to vector<16x64xi32>
    %3 = arith.cmpi eq, %2, %1 : vector<16x64xi32>
    %cst = arith.constant 1.000000e+00 : f32
    %cst_1 = arith.constant 0.000000e+00 : f32
    %4 = vector.broadcast %cst : f32 to vector<16x64xf32>
    %5 = vector.broadcast %cst_1 : f32 to vector<16x64xf32>
    %6 = arith.select %3, %4, %5 : vector<16x64xi1>, vector<16x64xf32>
    %7 = arith.truncf %6 : vector<16x64xf32> to vector<16x64xbf16>
    %c0_2 = arith.constant 0 : index
    %c0_3 = arith.constant 0 : index
    %8 = vector.load %arg2[%c0_2, %c0_3] : memref<64x128xbf16, #tpu.memory_space<vmem>>, vector<64x128xbf16>
    %cst_4 = arith.constant dense<0.000000e+00> : vector<16x128xf32>
    %9 = tpu.matmul %7, %8, %cst_4 {dimension_numbers = #tpu.dot_dimension_numbers<[1], [0], [0], [1], [0, 0, 1, 1], [], []>} : vector<16x64xbf16>, vector<64x128xbf16>, vector<16x128xf32> -> vector<16x128xf32>
    %c0_5 = arith.constant 0 : index
    %c0_6 = arith.constant 0 : index
    %10 = vector.load %arg3[%c0_5, %c0_6] : memref<8x128xf32, #tpu.memory_space<vmem>>, vector<8x128xf32>
    %11 = tpu.concatenate %10, %10 in 0 : vector<8x128xf32>, vector<8x128xf32> -> vector<16x128xf32>
    %12 = arith.addf %9, %11 : vector<16x128xf32>
    %c0_7 = arith.constant 0 : index
    %c0_8 = arith.constant 0 : index
    %13 = vector.load %arg4[%c0_7, %c0_8] : memref<2x128xf32, #tpu.memory_space<vmem>>, vector<1x128xf32>
    %14 = vector.broadcast %13 : vector<1x128xf32> to vector<16x128xf32>
    %15 = arith.addf %12, %14 : vector<16x128xf32>
    %c0_9 = arith.constant 0 : index
    %c0_10 = arith.constant 0 : index
    %16 = vector.load %arg5[%c0_9, %c0_10] : memref<1x128xf32, #tpu.memory_space<vmem>>, vector<1x128xf32>
    %c0_11 = arith.constant 0 : index
    %c0_12 = arith.constant 0 : index
    %17 = vector.load %arg6[%c0_11, %c0_12] : memref<1x128xf32, #tpu.memory_space<vmem>>, vector<1x128xf32>
    %cst_13 = arith.constant dense<0.000000e+00> : vector<16xf32>
    %18 = vector.multi_reduction <add>, %15, %cst_13 [1] : vector<16x128xf32> to vector<16xf32>
    %19 = vector.shape_cast %18 : vector<16xf32> to vector<16x1xf32>
    %cst_14 = arith.constant 1.280000e+02 : f32
    %20 = vector.broadcast %cst_14 : f32 to vector<16x1xf32>
    %21 = arith.divf %19, %20 : vector<16x1xf32>
    %22 = vector.broadcast %21 : vector<16x1xf32> to vector<16x128xf32>
    %23 = arith.subf %15, %22 : vector<16x128xf32>
    %24 = arith.mulf %23, %23 : vector<16x128xf32>
    %cst_15 = arith.constant dense<0.000000e+00> : vector<16xf32>
    %25 = vector.multi_reduction <add>, %24, %cst_15 [1] : vector<16x128xf32> to vector<16xf32>
    %26 = vector.shape_cast %25 : vector<16xf32> to vector<16x1xf32>
    %cst_16 = arith.constant 1.280000e+02 : f32
    %27 = vector.broadcast %cst_16 : f32 to vector<16x1xf32>
    %28 = arith.divf %26, %27 : vector<16x1xf32>
    %cst_17 = arith.constant 9.99999996E-13 : f32
    %29 = vector.broadcast %cst_17 : f32 to vector<16x1xf32>
    %30 = arith.addf %28, %29 : vector<16x1xf32>
    %31 = math.rsqrt %30 : vector<16x1xf32>
    %32 = vector.broadcast %31 : vector<16x1xf32> to vector<16x128xf32>
    %33 = arith.mulf %23, %32 : vector<16x128xf32>
    %34 = vector.broadcast %16 : vector<1x128xf32> to vector<16x128xf32>
    %35 = arith.mulf %33, %34 : vector<16x128xf32>
    %36 = vector.broadcast %17 : vector<1x128xf32> to vector<16x128xf32>
    %37 = arith.addf %35, %36 : vector<16x128xf32>
    %38 = arith.truncf %37 : vector<16x128xf32> to vector<16x128xbf16>
    %c0_18 = arith.constant 0 : index
    %c0_19 = arith.constant 0 : index
    %c0_20 = arith.constant 0 : index
    %39 = vector.load %arg7[%c0_18, %c0_19, %c0_20] : memref<2x128x384xbf16, #tpu.memory_space<vmem>>, vector<1x128x384xbf16>
    %40 = vector.shape_cast %39 : vector<1x128x384xbf16> to vector<128x384xbf16>
    %cst_21 = arith.constant dense<0.000000e+00> : vector<16x384xf32>
    %41 = tpu.matmul %38, %40, %cst_21 {dimension_numbers = #tpu.dot_dimension_numbers<[1], [0], [0], [1], [0, 0, 1, 1], [], []>} : vector<16x128xbf16>, vector<128x384xbf16>, vector<16x384xf32> -> vector<16x384xf32>
    %c0_22 = arith.constant 0 : index
    %c0_23 = arith.constant 0 : index
    %c0_24 = arith.constant 0 : index
    %42 = vector.load %arg8[%c0_22, %c0_23, %c0_24] : memref<2x1x384xf32, #tpu.memory_space<vmem>>, vector<1x1x384xf32>
    %43 = vector.shape_cast %42 : vector<1x1x384xf32> to vector<1x384xf32>
    %44 = vector.broadcast %43 : vector<1x384xf32> to vector<16x384xf32>
    %45 = arith.addf %41, %44 : vector<16x384xf32>
    %46 = vector.extract_strided_slice %45 {offsets = [0, 0], sizes = [16, 128], strides = [1, 1]} : vector<16x384xf32> to vector<16x128xf32>
    %47 = arith.truncf %46 : vector<16x128xf32> to vector<16x128xbf16>
    %48 = vector.extract_strided_slice %45 {offsets = [0, 128], sizes = [16, 128], strides = [1, 1]} : vector<16x384xf32> to vector<16x128xf32>
    %49 = arith.truncf %48 : vector<16x128xf32> to vector<16x128xbf16>
    %50 = vector.extract_strided_slice %45 {offsets = [0, 256], sizes = [16, 128], strides = [1, 1]} : vector<16x384xf32> to vector<16x128xf32>
    %51 = arith.truncf %50 : vector<16x128xf32> to vector<16x128xbf16>
    %52 = vector.extract_strided_slice %47 {offsets = [0, 0], sizes = [8, 64], strides = [1, 1]} : vector<16x128xbf16> to vector<8x64xbf16>
    %53 = vector.extract_strided_slice %49 {offsets = [0, 0], sizes = [8, 64], strides = [1, 1]} : vector<16x128xbf16> to vector<8x64xbf16>
    %cst_25 = arith.constant dense<0.000000e+00> : vector<8x8xf32>
    %54 = tpu.matmul %52, %53, %cst_25 {dimension_numbers = #tpu.dot_dimension_numbers<[1], [1], [0], [0], [0, 0, 1, 0], [], []>} : vector<8x64xbf16>, vector<8x64xbf16>, vector<8x8xf32> -> vector<8x8xf32>
    %55 = vector.extract_strided_slice %47 {offsets = [0, 64], sizes = [8, 64], strides = [1, 1]} : vector<16x128xbf16> to vector<8x64xbf16>
    %56 = vector.extract_strided_slice %49 {offsets = [0, 64], sizes = [8, 64], strides = [1, 1]} : vector<16x128xbf16> to vector<8x64xbf16>
    %cst_26 = arith.constant dense<0.000000e+00> : vector<8x8xf32>
    %57 = tpu.matmul %55, %56, %cst_26 {dimension_numbers = #tpu.dot_dimension_numbers<[1], [1], [0], [0], [0, 0, 1, 0], [], []>} : vector<8x64xbf16>, vector<8x64xbf16>, vector<8x8xf32> -> vector<8x8xf32>
    %58 = vector.extract_strided_slice %47 {offsets = [8, 0], sizes = [8, 64], strides = [1, 1]} : vector<16x128xbf16> to vector<8x64xbf16>
    %59 = vector.extract_strided_slice %49 {offsets = [8, 0], sizes = [8, 64], strides = [1, 1]} : vector<16x128xbf16> to vector<8x64xbf16>
    %cst_27 = arith.constant dense<0.000000e+00> : vector<8x8xf32>
    %60 = tpu.matmul %58, %59, %cst_27 {dimension_numbers = #tpu.dot_dimension_numbers<[1], [1], [0], [0], [0, 0, 1, 0], [], []>} : vector<8x64xbf16>, vector<8x64xbf16>, vector<8x8xf32> -> vector<8x8xf32>
    %61 = vector.extract_strided_slice %47 {offsets = [8, 64], sizes = [8, 64], strides = [1, 1]} : vector<16x128xbf16> to vector<8x64xbf16>
    %62 = vector.extract_strided_slice %49 {offsets = [8, 64], sizes = [8, 64], strides = [1, 1]} : vector<16x128xbf16> to vector<8x64xbf16>
    %cst_28 = arith.constant dense<0.000000e+00> : vector<8x8xf32>
    %63 = tpu.matmul %61, %62, %cst_28 {dimension_numbers = #tpu.dot_dimension_numbers<[1], [1], [0], [0], [0, 0, 1, 0], [], []>} : vector<8x64xbf16>, vector<8x64xbf16>, vector<8x8xf32> -> vector<8x8xf32>
    %64 = tpu.concatenate %54, %57, %60, %63 in 0 : vector<8x8xf32>, vector<8x8xf32>, vector<8x8xf32>, vector<8x8xf32> -> vector<32x8xf32>
    %cst_29 = arith.constant dense<0xFF800000> : vector<32xf32>
    %65 = vector.multi_reduction <maximumf>, %64, %cst_29 [1] : vector<32x8xf32> to vector<32xf32>
    %66 = vector.shape_cast %65 : vector<32xf32> to vector<32x1xf32>
    %67 = vector.broadcast %66 : vector<32x1xf32> to vector<32x8xf32>
    %68 = arith.subf %64, %67 : vector<32x8xf32>
    %69 = math.exp %68 : vector<32x8xf32>
    %cst_30 = arith.constant dense<0.000000e+00> : vector<32xf32>
    %70 = vector.multi_reduction <add>, %69, %cst_30 [1] : vector<32x8xf32> to vector<32xf32>
    %71 = vector.shape_cast %70 : vector<32xf32> to vector<32x1xf32>
    %72 = tpu.reciprocal %71 {approx = true} : vector<32x1xf32> -> vector<32x1xf32>
    %73 = vector.broadcast %72 : vector<32x1xf32> to vector<32x8xf32>
    %74 = arith.mulf %69, %73 : vector<32x8xf32>
    %75 = arith.truncf %74 : vector<32x8xf32> to vector<32x8xbf16>
    %76 = vector.extract_strided_slice %75 {offsets = [0, 0], sizes = [8, 8], strides = [1, 1]} : vector<32x8xbf16> to vector<8x8xbf16>
    %77 = vector.extract_strided_slice %51 {offsets = [0, 0], sizes = [8, 64], strides = [1, 1]} : vector<16x128xbf16> to vector<8x64xbf16>
    %cst_31 = arith.constant dense<0.000000e+00> : vector<8x64xf32>
    %78 = tpu.matmul %76, %77, %cst_31 {dimension_numbers = #tpu.dot_dimension_numbers<[1], [0], [0], [1], [0, 0, 1, 1], [], []>} : vector<8x8xbf16>, vector<8x64xbf16>, vector<8x64xf32> -> vector<8x64xf32>
    %79 = vector.extract_strided_slice %75 {offsets = [8, 0], sizes = [8, 8], strides = [1, 1]} : vector<32x8xbf16> to vector<8x8xbf16>
    %80 = vector.extract_strided_slice %51 {offsets = [0, 64], sizes = [8, 64], strides = [1, 1]} : vector<16x128xbf16> to vector<8x64xbf16>
    %cst_32 = arith.constant dense<0.000000e+00> : vector<8x64xf32>
    %81 = tpu.matmul %79, %80, %cst_32 {dimension_numbers = #tpu.dot_dimension_numbers<[1], [0], [0], [1], [0, 0, 1, 1], [], []>} : vector<8x8xbf16>, vector<8x64xbf16>, vector<8x64xf32> -> vector<8x64xf32>
    %82 = tpu.concatenate %78, %81 in 1 : vector<8x64xf32>, vector<8x64xf32> -> vector<8x128xf32>
    %83 = vector.extract_strided_slice %75 {offsets = [16, 0], sizes = [8, 8], strides = [1, 1]} : vector<32x8xbf16> to vector<8x8xbf16>
    %84 = vector.extract_strided_slice %51 {offsets = [8, 0], sizes = [8, 64], strides = [1, 1]} : vector<16x128xbf16> to vector<8x64xbf16>
    %cst_33 = arith.constant dense<0.000000e+00> : vector<8x64xf32>
    %85 = tpu.matmul %83, %84, %cst_33 {dimension_numbers = #tpu.dot_dimension_numbers<[1], [0], [0], [1], [0, 0, 1, 1], [], []>} : vector<8x8xbf16>, vector<8x64xbf16>, vector<8x64xf32> -> vector<8x64xf32>
    %86 = vector.extract_strided_slice %75 {offsets = [24, 0], sizes = [8, 8], strides = [1, 1]} : vector<32x8xbf16> to vector<8x8xbf16>
    %87 = vector.extract_strided_slice %51 {offsets = [8, 64], sizes = [8, 64], strides = [1, 1]} : vector<16x128xbf16> to vector<8x64xbf16>
    %cst_34 = arith.constant dense<0.000000e+00> : vector<8x64xf32>
    %88 = tpu.matmul %86, %87, %cst_34 {dimension_numbers = #tpu.dot_dimension_numbers<[1], [0], [0], [1], [0, 0, 1, 1], [], []>} : vector<8x8xbf16>, vector<8x64xbf16>, vector<8x64xf32> -> vector<8x64xf32>
    %89 = tpu.concatenate %85, %88 in 1 : vector<8x64xf32>, vector<8x64xf32> -> vector<8x128xf32>
    %90 = tpu.concatenate %82, %89 in 0 : vector<8x128xf32>, vector<8x128xf32> -> vector<16x128xf32>
    %91 = arith.truncf %90 : vector<16x128xf32> to vector<16x128xbf16>
    %c0_35 = arith.constant 0 : index
    %c0_36 = arith.constant 0 : index
    %c0_37 = arith.constant 0 : index
    %92 = vector.load %arg9[%c0_35, %c0_36, %c0_37] : memref<2x128x128xbf16, #tpu.memory_space<vmem>>, vector<1x128x128xbf16>
    %93 = vector.shape_cast %92 : vector<1x128x128xbf16> to vector<128x128xbf16>
    %cst_38 = arith.constant dense<0.000000e+00> : vector<16x128xf32>
    %94 = tpu.matmul %91, %93, %cst_38 {dimension_numbers = #tpu.dot_dimension_numbers<[1], [0], [0], [1], [0, 0, 1, 1], [], []>} : vector<16x128xbf16>, vector<128x128xbf16>, vector<16x128xf32> -> vector<16x128xf32>
    %c0_39 = arith.constant 0 : index
    %c0_40 = arith.constant 0 : index
    %c0_41 = arith.constant 0 : index
    %95 = vector.load %arg10[%c0_39, %c0_40, %c0_41] : memref<2x1x128xf32, #tpu.memory_space<vmem>>, vector<1x1x128xf32>
    %96 = vector.shape_cast %95 : vector<1x1x128xf32> to vector<1x128xf32>
    %97 = vector.broadcast %96 : vector<1x128xf32> to vector<16x128xf32>
    %98 = arith.addf %94, %97 : vector<16x128xf32>
    %99 = arith.addf %98, %37 : vector<16x128xf32>
    %c0_42 = arith.constant 0 : index
    %c0_43 = arith.constant 0 : index
    %c0_44 = arith.constant 0 : index
    %100 = vector.load %arg11[%c0_42, %c0_43, %c0_44] : memref<2x1x128xf32, #tpu.memory_space<vmem>>, vector<1x1x128xf32>
    %101 = vector.shape_cast %100 : vector<1x1x128xf32> to vector<1x128xf32>
    %c0_45 = arith.constant 0 : index
    %c0_46 = arith.constant 0 : index
    %c0_47 = arith.constant 0 : index
    %102 = vector.load %arg12[%c0_45, %c0_46, %c0_47] : memref<2x1x128xf32, #tpu.memory_space<vmem>>, vector<1x1x128xf32>
    %103 = vector.shape_cast %102 : vector<1x1x128xf32> to vector<1x128xf32>
    %cst_48 = arith.constant dense<0.000000e+00> : vector<16xf32>
    %104 = vector.multi_reduction <add>, %99, %cst_48 [1] : vector<16x128xf32> to vector<16xf32>
    %105 = vector.shape_cast %104 : vector<16xf32> to vector<16x1xf32>
    %cst_49 = arith.constant 1.280000e+02 : f32
    %106 = vector.broadcast %cst_49 : f32 to vector<16x1xf32>
    %107 = arith.divf %105, %106 : vector<16x1xf32>
    %108 = vector.broadcast %107 : vector<16x1xf32> to vector<16x128xf32>
    %109 = arith.subf %99, %108 : vector<16x128xf32>
    %110 = arith.mulf %109, %109 : vector<16x128xf32>
    %cst_50 = arith.constant dense<0.000000e+00> : vector<16xf32>
    %111 = vector.multi_reduction <add>, %110, %cst_50 [1] : vector<16x128xf32> to vector<16xf32>
    %112 = vector.shape_cast %111 : vector<16xf32> to vector<16x1xf32>
    %cst_51 = arith.constant 1.280000e+02 : f32
    %113 = vector.broadcast %cst_51 : f32 to vector<16x1xf32>
    %114 = arith.divf %112, %113 : vector<16x1xf32>
    %cst_52 = arith.constant 9.99999996E-13 : f32
    %115 = vector.broadcast %cst_52 : f32 to vector<16x1xf32>
    %116 = arith.addf %114, %115 : vector<16x1xf32>
    %117 = math.rsqrt %116 : vector<16x1xf32>
    %118 = vector.broadcast %117 : vector<16x1xf32> to vector<16x128xf32>
    %119 = arith.mulf %109, %118 : vector<16x128xf32>
    %120 = vector.broadcast %101 : vector<1x128xf32> to vector<16x128xf32>
    %121 = arith.mulf %119, %120 : vector<16x128xf32>
    %122 = vector.broadcast %103 : vector<1x128xf32> to vector<16x128xf32>
    %123 = arith.addf %121, %122 : vector<16x128xf32>
    %124 = arith.truncf %123 : vector<16x128xf32> to vector<16x128xbf16>
    %c0_53 = arith.constant 0 : index
    %c0_54 = arith.constant 0 : index
    %c0_55 = arith.constant 0 : index
    %125 = vector.load %arg13[%c0_53, %c0_54, %c0_55] : memref<2x128x256xbf16, #tpu.memory_space<vmem>>, vector<1x128x256xbf16>
    %126 = vector.shape_cast %125 : vector<1x128x256xbf16> to vector<128x256xbf16>
    %cst_56 = arith.constant dense<0.000000e+00> : vector<16x256xf32>
    %127 = tpu.matmul %124, %126, %cst_56 {dimension_numbers = #tpu.dot_dimension_numbers<[1], [0], [0], [1], [0, 0, 1, 1], [], []>} : vector<16x128xbf16>, vector<128x256xbf16>, vector<16x256xf32> -> vector<16x256xf32>
    %c0_57 = arith.constant 0 : index
    %c0_58 = arith.constant 0 : index
    %c0_59 = arith.constant 0 : index
    %128 = vector.load %arg14[%c0_57, %c0_58, %c0_59] : memref<2x1x256xf32, #tpu.memory_space<vmem>>, vector<1x1x256xf32>
    %129 = vector.shape_cast %128 : vector<1x1x256xf32> to vector<1x256xf32>
    %130 = vector.broadcast %129 : vector<1x256xf32> to vector<16x256xf32>
    %131 = arith.addf %127, %130 : vector<16x256xf32>
    %132 = arith.mulf %131, %131 : vector<16x256xf32>
    %133 = arith.mulf %131, %132 : vector<16x256xf32>
    %cst_60 = arith.constant 4.471500e-02 : f32
    %134 = vector.broadcast %cst_60 : f32 to vector<16x256xf32>
    %135 = arith.mulf %134, %133 : vector<16x256xf32>
    %136 = arith.addf %131, %135 : vector<16x256xf32>
    %cst_61 = arith.constant 0.797884583 : f32
    %137 = vector.broadcast %cst_61 : f32 to vector<16x256xf32>
    %138 = arith.mulf %137, %136 : vector<16x256xf32>
    %139 = math.tanh %138 : vector<16x256xf32>
    %cst_62 = arith.constant 1.000000e+00 : f32
    %140 = vector.broadcast %cst_62 : f32 to vector<16x256xf32>
    %141 = arith.addf %140, %139 : vector<16x256xf32>
    %cst_63 = arith.constant 5.000000e-01 : f32
    %142 = vector.broadcast %cst_63 : f32 to vector<16x256xf32>
    %143 = arith.mulf %142, %141 : vector<16x256xf32>
    %144 = arith.mulf %131, %143 : vector<16x256xf32>
    %145 = arith.truncf %144 : vector<16x256xf32> to vector<16x256xbf16>
    %c0_64 = arith.constant 0 : index
    %c0_65 = arith.constant 0 : index
    %c0_66 = arith.constant 0 : index
    %146 = vector.load %arg15[%c0_64, %c0_65, %c0_66] : memref<2x256x128xbf16, #tpu.memory_space<vmem>>, vector<1x256x128xbf16>
    %147 = vector.shape_cast %146 : vector<1x256x128xbf16> to vector<256x128xbf16>
    %cst_67 = arith.constant dense<0.000000e+00> : vector<16x128xf32>
    %148 = tpu.matmul %145, %147, %cst_67 {dimension_numbers = #tpu.dot_dimension_numbers<[1], [0], [0], [1], [0, 0, 1, 1], [], []>} : vector<16x256xbf16>, vector<256x128xbf16>, vector<16x128xf32> -> vector<16x128xf32>
    %c0_68 = arith.constant 0 : index
    %c0_69 = arith.constant 0 : index
    %c0_70 = arith.constant 0 : index
    %149 = vector.load %arg16[%c0_68, %c0_69, %c0_70] : memref<2x1x128xf32, #tpu.memory_space<vmem>>, vector<1x1x128xf32>
    %150 = vector.shape_cast %149 : vector<1x1x128xf32> to vector<1x128xf32>
    %151 = vector.broadcast %150 : vector<1x128xf32> to vector<16x128xf32>
    %152 = arith.addf %148, %151 : vector<16x128xf32>
    %153 = arith.addf %152, %123 : vector<16x128xf32>
    %c0_71 = arith.constant 0 : index
    %c0_72 = arith.constant 0 : index
    %c0_73 = arith.constant 0 : index
    %154 = vector.load %arg17[%c0_71, %c0_72, %c0_73] : memref<2x1x128xf32, #tpu.memory_space<vmem>>, vector<1x1x128xf32>
    %155 = vector.shape_cast %154 : vector<1x1x128xf32> to vector<1x128xf32>
    %c0_74 = arith.constant 0 : index
    %c0_75 = arith.constant 0 : index
    %c0_76 = arith.constant 0 : index
    %156 = vector.load %arg18[%c0_74, %c0_75, %c0_76] : memref<2x1x128xf32, #tpu.memory_space<vmem>>, vector<1x1x128xf32>
    %157 = vector.shape_cast %156 : vector<1x1x128xf32> to vector<1x128xf32>
    %cst_77 = arith.constant dense<0.000000e+00> : vector<16xf32>
    %158 = vector.multi_reduction <add>, %153, %cst_77 [1] : vector<16x128xf32> to vector<16xf32>
    %159 = vector.shape_cast %158 : vector<16xf32> to vector<16x1xf32>
    %cst_78 = arith.constant 1.280000e+02 : f32
    %160 = vector.broadcast %cst_78 : f32 to vector<16x1xf32>
    %161 = arith.divf %159, %160 : vector<16x1xf32>
    %162 = vector.broadcast %161 : vector<16x1xf32> to vector<16x128xf32>
    %163 = arith.subf %153, %162 : vector<16x128xf32>
    %164 = arith.mulf %163, %163 : vector<16x128xf32>
    %cst_79 = arith.constant dense<0.000000e+00> : vector<16xf32>
    %165 = vector.multi_reduction <add>, %164, %cst_79 [1] : vector<16x128xf32> to vector<16xf32>
    %166 = vector.shape_cast %165 : vector<16xf32> to vector<16x1xf32>
    %cst_80 = arith.constant 1.280000e+02 : f32
    %167 = vector.broadcast %cst_80 : f32 to vector<16x1xf32>
    %168 = arith.divf %166, %167 : vector<16x1xf32>
    %cst_81 = arith.constant 9.99999996E-13 : f32
    %169 = vector.broadcast %cst_81 : f32 to vector<16x1xf32>
    %170 = arith.addf %168, %169 : vector<16x1xf32>
    %171 = math.rsqrt %170 : vector<16x1xf32>
    %172 = vector.broadcast %171 : vector<16x1xf32> to vector<16x128xf32>
    %173 = arith.mulf %163, %172 : vector<16x128xf32>
    %174 = vector.broadcast %155 : vector<1x128xf32> to vector<16x128xf32>
    %175 = arith.mulf %173, %174 : vector<16x128xf32>
    %176 = vector.broadcast %157 : vector<1x128xf32> to vector<16x128xf32>
    %177 = arith.addf %175, %176 : vector<16x128xf32>
    %178 = arith.truncf %177 : vector<16x128xf32> to vector<16x128xbf16>
    %c1 = arith.constant 1 : index
    %c0_82 = arith.constant 0 : index
    %c0_83 = arith.constant 0 : index
    %179 = vector.load %arg7[%c1, %c0_82, %c0_83] : memref<2x128x384xbf16, #tpu.memory_space<vmem>>, vector<1x128x384xbf16>
    %180 = vector.shape_cast %179 : vector<1x128x384xbf16> to vector<128x384xbf16>
    %cst_84 = arith.constant dense<0.000000e+00> : vector<16x384xf32>
    %181 = tpu.matmul %178, %180, %cst_84 {dimension_numbers = #tpu.dot_dimension_numbers<[1], [0], [0], [1], [0, 0, 1, 1], [], []>} : vector<16x128xbf16>, vector<128x384xbf16>, vector<16x384xf32> -> vector<16x384xf32>
    %c1_85 = arith.constant 1 : index
    %c0_86 = arith.constant 0 : index
    %c0_87 = arith.constant 0 : index
    %182 = vector.load %arg8[%c1_85, %c0_86, %c0_87] : memref<2x1x384xf32, #tpu.memory_space<vmem>>, vector<1x1x384xf32>
    %183 = vector.shape_cast %182 : vector<1x1x384xf32> to vector<1x384xf32>
    %184 = vector.broadcast %183 : vector<1x384xf32> to vector<16x384xf32>
    %185 = arith.addf %181, %184 : vector<16x384xf32>
    %186 = vector.extract_strided_slice %185 {offsets = [0, 0], sizes = [16, 128], strides = [1, 1]} : vector<16x384xf32> to vector<16x128xf32>
    %187 = arith.truncf %186 : vector<16x128xf32> to vector<16x128xbf16>
    %188 = vector.extract_strided_slice %185 {offsets = [0, 128], sizes = [16, 128], strides = [1, 1]} : vector<16x384xf32> to vector<16x128xf32>
    %189 = arith.truncf %188 : vector<16x128xf32> to vector<16x128xbf16>
    %190 = vector.extract_strided_slice %185 {offsets = [0, 256], sizes = [16, 128], strides = [1, 1]} : vector<16x384xf32> to vector<16x128xf32>
    %191 = arith.truncf %190 : vector<16x128xf32> to vector<16x128xbf16>
    %192 = vector.extract_strided_slice %187 {offsets = [0, 0], sizes = [8, 64], strides = [1, 1]} : vector<16x128xbf16> to vector<8x64xbf16>
    %193 = vector.extract_strided_slice %189 {offsets = [0, 0], sizes = [8, 64], strides = [1, 1]} : vector<16x128xbf16> to vector<8x64xbf16>
    %cst_88 = arith.constant dense<0.000000e+00> : vector<8x8xf32>
    %194 = tpu.matmul %192, %193, %cst_88 {dimension_numbers = #tpu.dot_dimension_numbers<[1], [1], [0], [0], [0, 0, 1, 0], [], []>} : vector<8x64xbf16>, vector<8x64xbf16>, vector<8x8xf32> -> vector<8x8xf32>
    %195 = vector.extract_strided_slice %187 {offsets = [0, 64], sizes = [8, 64], strides = [1, 1]} : vector<16x128xbf16> to vector<8x64xbf16>
    %196 = vector.extract_strided_slice %189 {offsets = [0, 64], sizes = [8, 64], strides = [1, 1]} : vector<16x128xbf16> to vector<8x64xbf16>
    %cst_89 = arith.constant dense<0.000000e+00> : vector<8x8xf32>
    %197 = tpu.matmul %195, %196, %cst_89 {dimension_numbers = #tpu.dot_dimension_numbers<[1], [1], [0], [0], [0, 0, 1, 0], [], []>} : vector<8x64xbf16>, vector<8x64xbf16>, vector<8x8xf32> -> vector<8x8xf32>
    %198 = vector.extract_strided_slice %187 {offsets = [8, 0], sizes = [8, 64], strides = [1, 1]} : vector<16x128xbf16> to vector<8x64xbf16>
    %199 = vector.extract_strided_slice %189 {offsets = [8, 0], sizes = [8, 64], strides = [1, 1]} : vector<16x128xbf16> to vector<8x64xbf16>
    %cst_90 = arith.constant dense<0.000000e+00> : vector<8x8xf32>
    %200 = tpu.matmul %198, %199, %cst_90 {dimension_numbers = #tpu.dot_dimension_numbers<[1], [1], [0], [0], [0, 0, 1, 0], [], []>} : vector<8x64xbf16>, vector<8x64xbf16>, vector<8x8xf32> -> vector<8x8xf32>
    %201 = vector.extract_strided_slice %187 {offsets = [8, 64], sizes = [8, 64], strides = [1, 1]} : vector<16x128xbf16> to vector<8x64xbf16>
    %202 = vector.extract_strided_slice %189 {offsets = [8, 64], sizes = [8, 64], strides = [1, 1]} : vector<16x128xbf16> to vector<8x64xbf16>
    %cst_91 = arith.constant dense<0.000000e+00> : vector<8x8xf32>
    %203 = tpu.matmul %201, %202, %cst_91 {dimension_numbers = #tpu.dot_dimension_numbers<[1], [1], [0], [0], [0, 0, 1, 0], [], []>} : vector<8x64xbf16>, vector<8x64xbf16>, vector<8x8xf32> -> vector<8x8xf32>
    %204 = tpu.concatenate %194, %197, %200, %203 in 0 : vector<8x8xf32>, vector<8x8xf32>, vector<8x8xf32>, vector<8x8xf32> -> vector<32x8xf32>
    %cst_92 = arith.constant dense<0xFF800000> : vector<32xf32>
    %205 = vector.multi_reduction <maximumf>, %204, %cst_92 [1] : vector<32x8xf32> to vector<32xf32>
    %206 = vector.shape_cast %205 : vector<32xf32> to vector<32x1xf32>
    %207 = vector.broadcast %206 : vector<32x1xf32> to vector<32x8xf32>
    %208 = arith.subf %204, %207 : vector<32x8xf32>
    %209 = math.exp %208 : vector<32x8xf32>
    %cst_93 = arith.constant dense<0.000000e+00> : vector<32xf32>
    %210 = vector.multi_reduction <add>, %209, %cst_93 [1] : vector<32x8xf32> to vector<32xf32>
    %211 = vector.shape_cast %210 : vector<32xf32> to vector<32x1xf32>
    %212 = tpu.reciprocal %211 {approx = true} : vector<32x1xf32> -> vector<32x1xf32>
    %213 = vector.broadcast %212 : vector<32x1xf32> to vector<32x8xf32>
    %214 = arith.mulf %209, %213 : vector<32x8xf32>
    %215 = arith.truncf %214 : vector<32x8xf32> to vector<32x8xbf16>
    %216 = vector.extract_strided_slice %215 {offsets = [0, 0], sizes = [8, 8], strides = [1, 1]} : vector<32x8xbf16> to vector<8x8xbf16>
    %217 = vector.extract_strided_slice %191 {offsets = [0, 0], sizes = [8, 64], strides = [1, 1]} : vector<16x128xbf16> to vector<8x64xbf16>
    %cst_94 = arith.constant dense<0.000000e+00> : vector<8x64xf32>
    %218 = tpu.matmul %216, %217, %cst_94 {dimension_numbers = #tpu.dot_dimension_numbers<[1], [0], [0], [1], [0, 0, 1, 1], [], []>} : vector<8x8xbf16>, vector<8x64xbf16>, vector<8x64xf32> -> vector<8x64xf32>
    %219 = vector.extract_strided_slice %215 {offsets = [8, 0], sizes = [8, 8], strides = [1, 1]} : vector<32x8xbf16> to vector<8x8xbf16>
    %220 = vector.extract_strided_slice %191 {offsets = [0, 64], sizes = [8, 64], strides = [1, 1]} : vector<16x128xbf16> to vector<8x64xbf16>
    %cst_95 = arith.constant dense<0.000000e+00> : vector<8x64xf32>
    %221 = tpu.matmul %219, %220, %cst_95 {dimension_numbers = #tpu.dot_dimension_numbers<[1], [0], [0], [1], [0, 0, 1, 1], [], []>} : vector<8x8xbf16>, vector<8x64xbf16>, vector<8x64xf32> -> vector<8x64xf32>
    %222 = tpu.concatenate %218, %221 in 1 : vector<8x64xf32>, vector<8x64xf32> -> vector<8x128xf32>
    %223 = vector.extract_strided_slice %215 {offsets = [16, 0], sizes = [8, 8], strides = [1, 1]} : vector<32x8xbf16> to vector<8x8xbf16>
    %224 = vector.extract_strided_slice %191 {offsets = [8, 0], sizes = [8, 64], strides = [1, 1]} : vector<16x128xbf16> to vector<8x64xbf16>
    %cst_96 = arith.constant dense<0.000000e+00> : vector<8x64xf32>
    %225 = tpu.matmul %223, %224, %cst_96 {dimension_numbers = #tpu.dot_dimension_numbers<[1], [0], [0], [1], [0, 0, 1, 1], [], []>} : vector<8x8xbf16>, vector<8x64xbf16>, vector<8x64xf32> -> vector<8x64xf32>
    %226 = vector.extract_strided_slice %215 {offsets = [24, 0], sizes = [8, 8], strides = [1, 1]} : vector<32x8xbf16> to vector<8x8xbf16>
    %227 = vector.extract_strided_slice %191 {offsets = [8, 64], sizes = [8, 64], strides = [1, 1]} : vector<16x128xbf16> to vector<8x64xbf16>
    %cst_97 = arith.constant dense<0.000000e+00> : vector<8x64xf32>
    %228 = tpu.matmul %226, %227, %cst_97 {dimension_numbers = #tpu.dot_dimension_numbers<[1], [0], [0], [1], [0, 0, 1, 1], [], []>} : vector<8x8xbf16>, vector<8x64xbf16>, vector<8x64xf32> -> vector<8x64xf32>
    %229 = tpu.concatenate %225, %228 in 1 : vector<8x64xf32>, vector<8x64xf32> -> vector<8x128xf32>
    %230 = tpu.concatenate %222, %229 in 0 : vector<8x128xf32>, vector<8x128xf32> -> vector<16x128xf32>
    %231 = arith.truncf %230 : vector<16x128xf32> to vector<16x128xbf16>
    %c1_98 = arith.constant 1 : index
    %c0_99 = arith.constant 0 : index
    %c0_100 = arith.constant 0 : index
    %232 = vector.load %arg9[%c1_98, %c0_99, %c0_100] : memref<2x128x128xbf16, #tpu.memory_space<vmem>>, vector<1x128x128xbf16>
    %233 = vector.shape_cast %232 : vector<1x128x128xbf16> to vector<128x128xbf16>
    %cst_101 = arith.constant dense<0.000000e+00> : vector<16x128xf32>
    %234 = tpu.matmul %231, %233, %cst_101 {dimension_numbers = #tpu.dot_dimension_numbers<[1], [0], [0], [1], [0, 0, 1, 1], [], []>} : vector<16x128xbf16>, vector<128x128xbf16>, vector<16x128xf32> -> vector<16x128xf32>
    %c1_102 = arith.constant 1 : index
    %c0_103 = arith.constant 0 : index
    %c0_104 = arith.constant 0 : index
    %235 = vector.load %arg10[%c1_102, %c0_103, %c0_104] : memref<2x1x128xf32, #tpu.memory_space<vmem>>, vector<1x1x128xf32>
    %236 = vector.shape_cast %235 : vector<1x1x128xf32> to vector<1x128xf32>
    %237 = vector.broadcast %236 : vector<1x128xf32> to vector<16x128xf32>
    %238 = arith.addf %234, %237 : vector<16x128xf32>
    %239 = arith.addf %238, %177 : vector<16x128xf32>
    %c1_105 = arith.constant 1 : index
    %c0_106 = arith.constant 0 : index
    %c0_107 = arith.constant 0 : index
    %240 = vector.load %arg11[%c1_105, %c0_106, %c0_107] : memref<2x1x128xf32, #tpu.memory_space<vmem>>, vector<1x1x128xf32>
    %241 = vector.shape_cast %240 : vector<1x1x128xf32> to vector<1x128xf32>
    %c1_108 = arith.constant 1 : index
    %c0_109 = arith.constant 0 : index
    %c0_110 = arith.constant 0 : index
    %242 = vector.load %arg12[%c1_108, %c0_109, %c0_110] : memref<2x1x128xf32, #tpu.memory_space<vmem>>, vector<1x1x128xf32>
    %243 = vector.shape_cast %242 : vector<1x1x128xf32> to vector<1x128xf32>
    %cst_111 = arith.constant dense<0.000000e+00> : vector<16xf32>
    %244 = vector.multi_reduction <add>, %239, %cst_111 [1] : vector<16x128xf32> to vector<16xf32>
    %245 = vector.shape_cast %244 : vector<16xf32> to vector<16x1xf32>
    %cst_112 = arith.constant 1.280000e+02 : f32
    %246 = vector.broadcast %cst_112 : f32 to vector<16x1xf32>
    %247 = arith.divf %245, %246 : vector<16x1xf32>
    %248 = vector.broadcast %247 : vector<16x1xf32> to vector<16x128xf32>
    %249 = arith.subf %239, %248 : vector<16x128xf32>
    %250 = arith.mulf %249, %249 : vector<16x128xf32>
    %cst_113 = arith.constant dense<0.000000e+00> : vector<16xf32>
    %251 = vector.multi_reduction <add>, %250, %cst_113 [1] : vector<16x128xf32> to vector<16xf32>
    %252 = vector.shape_cast %251 : vector<16xf32> to vector<16x1xf32>
    %cst_114 = arith.constant 1.280000e+02 : f32
    %253 = vector.broadcast %cst_114 : f32 to vector<16x1xf32>
    %254 = arith.divf %252, %253 : vector<16x1xf32>
    %cst_115 = arith.constant 9.99999996E-13 : f32
    %255 = vector.broadcast %cst_115 : f32 to vector<16x1xf32>
    %256 = arith.addf %254, %255 : vector<16x1xf32>
    %257 = math.rsqrt %256 : vector<16x1xf32>
    %258 = vector.broadcast %257 : vector<16x1xf32> to vector<16x128xf32>
    %259 = arith.mulf %249, %258 : vector<16x128xf32>
    %260 = vector.broadcast %241 : vector<1x128xf32> to vector<16x128xf32>
    %261 = arith.mulf %259, %260 : vector<16x128xf32>
    %262 = vector.broadcast %243 : vector<1x128xf32> to vector<16x128xf32>
    %263 = arith.addf %261, %262 : vector<16x128xf32>
    %264 = arith.truncf %263 : vector<16x128xf32> to vector<16x128xbf16>
    %c1_116 = arith.constant 1 : index
    %c0_117 = arith.constant 0 : index
    %c0_118 = arith.constant 0 : index
    %265 = vector.load %arg13[%c1_116, %c0_117, %c0_118] : memref<2x128x256xbf16, #tpu.memory_space<vmem>>, vector<1x128x256xbf16>
    %266 = vector.shape_cast %265 : vector<1x128x256xbf16> to vector<128x256xbf16>
    %cst_119 = arith.constant dense<0.000000e+00> : vector<16x256xf32>
    %267 = tpu.matmul %264, %266, %cst_119 {dimension_numbers = #tpu.dot_dimension_numbers<[1], [0], [0], [1], [0, 0, 1, 1], [], []>} : vector<16x128xbf16>, vector<128x256xbf16>, vector<16x256xf32> -> vector<16x256xf32>
    %c1_120 = arith.constant 1 : index
    %c0_121 = arith.constant 0 : index
    %c0_122 = arith.constant 0 : index
    %268 = vector.load %arg14[%c1_120, %c0_121, %c0_122] : memref<2x1x256xf32, #tpu.memory_space<vmem>>, vector<1x1x256xf32>
    %269 = vector.shape_cast %268 : vector<1x1x256xf32> to vector<1x256xf32>
    %270 = vector.broadcast %269 : vector<1x256xf32> to vector<16x256xf32>
    %271 = arith.addf %267, %270 : vector<16x256xf32>
    %272 = arith.mulf %271, %271 : vector<16x256xf32>
    %273 = arith.mulf %271, %272 : vector<16x256xf32>
    %cst_123 = arith.constant 4.471500e-02 : f32
    %274 = vector.broadcast %cst_123 : f32 to vector<16x256xf32>
    %275 = arith.mulf %274, %273 : vector<16x256xf32>
    %276 = arith.addf %271, %275 : vector<16x256xf32>
    %cst_124 = arith.constant 0.797884583 : f32
    %277 = vector.broadcast %cst_124 : f32 to vector<16x256xf32>
    %278 = arith.mulf %277, %276 : vector<16x256xf32>
    %279 = math.tanh %278 : vector<16x256xf32>
    %cst_125 = arith.constant 1.000000e+00 : f32
    %280 = vector.broadcast %cst_125 : f32 to vector<16x256xf32>
    %281 = arith.addf %280, %279 : vector<16x256xf32>
    %cst_126 = arith.constant 5.000000e-01 : f32
    %282 = vector.broadcast %cst_126 : f32 to vector<16x256xf32>
    %283 = arith.mulf %282, %281 : vector<16x256xf32>
    %284 = arith.mulf %271, %283 : vector<16x256xf32>
    %285 = arith.truncf %284 : vector<16x256xf32> to vector<16x256xbf16>
    %c1_127 = arith.constant 1 : index
    %c0_128 = arith.constant 0 : index
    %c0_129 = arith.constant 0 : index
    %286 = vector.load %arg15[%c1_127, %c0_128, %c0_129] : memref<2x256x128xbf16, #tpu.memory_space<vmem>>, vector<1x256x128xbf16>
    %287 = vector.shape_cast %286 : vector<1x256x128xbf16> to vector<256x128xbf16>
    %cst_130 = arith.constant dense<0.000000e+00> : vector<16x128xf32>
    %288 = tpu.matmul %285, %287, %cst_130 {dimension_numbers = #tpu.dot_dimension_numbers<[1], [0], [0], [1], [0, 0, 1, 1], [], []>} : vector<16x256xbf16>, vector<256x128xbf16>, vector<16x128xf32> -> vector<16x128xf32>
    %c1_131 = arith.constant 1 : index
    %c0_132 = arith.constant 0 : index
    %c0_133 = arith.constant 0 : index
    %289 = vector.load %arg16[%c1_131, %c0_132, %c0_133] : memref<2x1x128xf32, #tpu.memory_space<vmem>>, vector<1x1x128xf32>
    %290 = vector.shape_cast %289 : vector<1x1x128xf32> to vector<1x128xf32>
    %291 = vector.broadcast %290 : vector<1x128xf32> to vector<16x128xf32>
    %292 = arith.addf %288, %291 : vector<16x128xf32>
    %293 = arith.addf %292, %263 : vector<16x128xf32>
    %c1_134 = arith.constant 1 : index
    %c0_135 = arith.constant 0 : index
    %c0_136 = arith.constant 0 : index
    %294 = vector.load %arg17[%c1_134, %c0_135, %c0_136] : memref<2x1x128xf32, #tpu.memory_space<vmem>>, vector<1x1x128xf32>
    %295 = vector.shape_cast %294 : vector<1x1x128xf32> to vector<1x128xf32>
    %c1_137 = arith.constant 1 : index
    %c0_138 = arith.constant 0 : index
    %c0_139 = arith.constant 0 : index
    %296 = vector.load %arg18[%c1_137, %c0_138, %c0_139] : memref<2x1x128xf32, #tpu.memory_space<vmem>>, vector<1x1x128xf32>
    %297 = vector.shape_cast %296 : vector<1x1x128xf32> to vector<1x128xf32>
    %cst_140 = arith.constant dense<0.000000e+00> : vector<16xf32>
    %298 = vector.multi_reduction <add>, %293, %cst_140 [1] : vector<16x128xf32> to vector<16xf32>
    %299 = vector.shape_cast %298 : vector<16xf32> to vector<16x1xf32>
    %cst_141 = arith.constant 1.280000e+02 : f32
    %300 = vector.broadcast %cst_141 : f32 to vector<16x1xf32>
    %301 = arith.divf %299, %300 : vector<16x1xf32>
    %302 = vector.broadcast %301 : vector<16x1xf32> to vector<16x128xf32>
    %303 = arith.subf %293, %302 : vector<16x128xf32>
    %304 = arith.mulf %303, %303 : vector<16x128xf32>
    %cst_142 = arith.constant dense<0.000000e+00> : vector<16xf32>
    %305 = vector.multi_reduction <add>, %304, %cst_142 [1] : vector<16x128xf32> to vector<16xf32>
    %306 = vector.shape_cast %305 : vector<16xf32> to vector<16x1xf32>
    %cst_143 = arith.constant 1.280000e+02 : f32
    %307 = vector.broadcast %cst_143 : f32 to vector<16x1xf32>
    %308 = arith.divf %306, %307 : vector<16x1xf32>
    %cst_144 = arith.constant 9.99999996E-13 : f32
    %309 = vector.broadcast %cst_144 : f32 to vector<16x1xf32>
    %310 = arith.addf %308, %309 : vector<16x1xf32>
    %311 = math.rsqrt %310 : vector<16x1xf32>
    %312 = vector.broadcast %311 : vector<16x1xf32> to vector<16x128xf32>
    %313 = arith.mulf %303, %312 : vector<16x128xf32>
    %314 = vector.broadcast %295 : vector<1x128xf32> to vector<16x128xf32>
    %315 = arith.mulf %313, %314 : vector<16x128xf32>
    %316 = vector.broadcast %297 : vector<1x128xf32> to vector<16x128xf32>
    %317 = arith.addf %315, %316 : vector<16x128xf32>
    %318 = vector.extract_strided_slice %317 {offsets = [0, 0], sizes = [1, 128], strides = [1, 1]} : vector<16x128xf32> to vector<1x128xf32>
    %319 = vector.extract_strided_slice %317 {offsets = [8, 0], sizes = [1, 128], strides = [1, 1]} : vector<16x128xf32> to vector<1x128xf32>
    %cst_145 = arith.constant 0.000000e+00 : f32
    %320 = vector.broadcast %cst_145 : f32 to vector<6x128xf32>
    %321 = tpu.concatenate %318, %319, %320 in 0 : vector<1x128xf32>, vector<1x128xf32>, vector<6x128xf32> -> vector<8x128xf32>
    %322 = arith.truncf %321 : vector<8x128xf32> to vector<8x128xbf16>
    %c0_146 = arith.constant 0 : index
    %c0_147 = arith.constant 0 : index
    %323 = vector.load %arg19[%c0_146, %c0_147] : memref<128x128xbf16, #tpu.memory_space<vmem>>, vector<128x128xbf16>
    %cst_148 = arith.constant dense<0.000000e+00> : vector<8x128xf32>
    %324 = tpu.matmul %322, %323, %cst_148 {dimension_numbers = #tpu.dot_dimension_numbers<[1], [0], [0], [1], [0, 0, 1, 1], [], []>} : vector<8x128xbf16>, vector<128x128xbf16>, vector<8x128xf32> -> vector<8x128xf32>
    %c0_149 = arith.constant 0 : index
    %c0_150 = arith.constant 0 : index
    %325 = vector.load %arg20[%c0_149, %c0_150] : memref<1x128xf32, #tpu.memory_space<vmem>>, vector<1x128xf32>
    %326 = vector.broadcast %325 : vector<1x128xf32> to vector<8x128xf32>
    %327 = arith.addf %324, %326 : vector<8x128xf32>
    %328 = arith.negf %327 : vector<8x128xf32>
    %329 = math.exp %328 : vector<8x128xf32>
    %cst_151 = arith.constant 1.000000e+00 : f32
    %330 = vector.broadcast %cst_151 : f32 to vector<8x128xf32>
    %331 = arith.addf %330, %329 : vector<8x128xf32>
    %332 = arith.divf %330, %331 : vector<8x128xf32>
    %c0_152 = arith.constant 0 : index
    %c0_153 = arith.constant 0 : index
    %333 = vector.load %arg21[%c0_152, %c0_153] : memref<8x128xf32, #tpu.memory_space<vmem>>, vector<8x128xf32>
    tpu.vector_store %arg21[%c0_152, %c0_153], %332 {strides = array<i32>} : memref<8x128xf32, #tpu.memory_space<vmem>>, vector<8x128xf32>,
    return
  }
  func.func @transform_0(%arg0: i32) -> (i32, i32) {
    %c0_i32 = arith.constant 0 : i32
    %c0_i32_0 = arith.constant 0 : i32
    %c0_i32_1 = arith.constant 0 : i32
    return %c0_i32, %c0_i32_0 : i32, i32
  }
  func.func @transform_1(%arg0: i32) -> (i32, i32) {
    %c0_i32 = arith.constant 0 : i32
    %c0_i32_0 = arith.constant 0 : i32
    %c0_i32_1 = arith.constant 0 : i32
    return %c0_i32, %c0_i32_0 : i32, i32
  }
  func.func @transform_2(%arg0: i32) -> (i32, i32) {
    %c0_i32 = arith.constant 0 : i32
    %c0_i32_0 = arith.constant 0 : i32
    %c0_i32_1 = arith.constant 0 : i32
    return %c0_i32, %c0_i32_0 : i32, i32
  }
  func.func @transform_3(%arg0: i32) -> (i32, i32) {
    %c0_i32 = arith.constant 0 : i32
    %c0_i32_0 = arith.constant 0 : i32
    %c0_i32_1 = arith.constant 0 : i32
    return %c0_i32, %c0_i32_0 : i32, i32
  }
  func.func @transform_4(%arg0: i32) -> (i32, i32) {
    %c0_i32 = arith.constant 0 : i32
    %c0_i32_0 = arith.constant 0 : i32
    %c0_i32_1 = arith.constant 0 : i32
    return %c0_i32, %c0_i32_0 : i32, i32
  }
  func.func @transform_5(%arg0: i32) -> (i32, i32) {
    %c0_i32 = arith.constant 0 : i32
    %c0_i32_0 = arith.constant 0 : i32
    %c0_i32_1 = arith.constant 0 : i32
    return %c0_i32, %c0_i32_0 : i32, i32
  }
  func.func @transform_6(%arg0: i32) -> (i32, i32, i32) {
    %c0_i32 = arith.constant 0 : i32
    %c0_i32_0 = arith.constant 0 : i32
    %c0_i32_1 = arith.constant 0 : i32
    %c0_i32_2 = arith.constant 0 : i32
    return %c0_i32, %c0_i32_0, %c0_i32_1 : i32, i32, i32
  }
  func.func @transform_7(%arg0: i32) -> (i32, i32, i32) {
    %c0_i32 = arith.constant 0 : i32
    %c0_i32_0 = arith.constant 0 : i32
    %c0_i32_1 = arith.constant 0 : i32
    %c0_i32_2 = arith.constant 0 : i32
    return %c0_i32, %c0_i32_0, %c0_i32_1 : i32, i32, i32
  }
  func.func @transform_8(%arg0: i32) -> (i32, i32, i32) {
    %c0_i32 = arith.constant 0 : i32
    %c0_i32_0 = arith.constant 0 : i32
    %c0_i32_1 = arith.constant 0 : i32
    %c0_i32_2 = arith.constant 0 : i32
    return %c0_i32, %c0_i32_0, %c0_i32_1 : i32, i32, i32
  }
  func.func @transform_9(%arg0: i32) -> (i32, i32, i32) {
    %c0_i32 = arith.constant 0 : i32
    %c0_i32_0 = arith.constant 0 : i32
    %c0_i32_1 = arith.constant 0 : i32
    %c0_i32_2 = arith.constant 0 : i32
    return %c0_i32, %c0_i32_0, %c0_i32_1 : i32, i32, i32
  }
  func.func @transform_10(%arg0: i32) -> (i32, i32, i32) {
    %c0_i32 = arith.constant 0 : i32
    %c0_i32_0 = arith.constant 0 : i32
    %c0_i32_1 = arith.constant 0 : i32
    %c0_i32_2 = arith.constant 0 : i32
    return %c0_i32, %c0_i32_0, %c0_i32_1 : i32, i32, i32
  }
  func.func @transform_11(%arg0: i32) -> (i32, i32, i32) {
    %c0_i32 = arith.constant 0 : i32
    %c0_i32_0 = arith.constant 0 : i32
    %c0_i32_1 = arith.constant 0 : i32
    %c0_i32_2 = arith.constant 0 : i32
    return %c0_i32, %c0_i32_0, %c0_i32_1 : i32, i32, i32
  }
  func.func @transform_12(%arg0: i32) -> (i32, i32, i32) {
    %c0_i32 = arith.constant 0 : i32
    %c0_i32_0 = arith.constant 0 : i32
    %c0_i32_1 = arith.constant 0 : i32
    %c0_i32_2 = arith.constant 0 : i32
    return %c0_i32, %c0_i32_0, %c0_i32_1 : i32, i32, i32
  }
  func.func @transform_13(%arg0: i32) -> (i32, i32, i32) {
    %c0_i32 = arith.constant 0 : i32
    %c0_i32_0 = arith.constant 0 : i32
    %c0_i32_1 = arith.constant 0 : i32
    %c0_i32_2 = arith.constant 0 : i32
    return %c0_i32, %c0_i32_0, %c0_i32_1 : i32, i32, i32
  }
  func.func @transform_14(%arg0: i32) -> (i32, i32, i32) {
    %c0_i32 = arith.constant 0 : i32
    %c0_i32_0 = arith.constant 0 : i32
    %c0_i32_1 = arith.constant 0 : i32
    %c0_i32_2 = arith.constant 0 : i32
    return %c0_i32, %c0_i32_0, %c0_i32_1 : i32, i32, i32
  }
  func.func @transform_15(%arg0: i32) -> (i32, i32, i32) {
    %c0_i32 = arith.constant 0 : i32
    %c0_i32_0 = arith.constant 0 : i32
    %c0_i32_1 = arith.constant 0 : i32
    %c0_i32_2 = arith.constant 0 : i32
    return %c0_i32, %c0_i32_0, %c0_i32_1 : i32, i32, i32
  }
  func.func @transform_16(%arg0: i32) -> (i32, i32, i32) {
    %c0_i32 = arith.constant 0 : i32
    %c0_i32_0 = arith.constant 0 : i32
    %c0_i32_1 = arith.constant 0 : i32
    %c0_i32_2 = arith.constant 0 : i32
    return %c0_i32, %c0_i32_0, %c0_i32_1 : i32, i32, i32
  }
  func.func @transform_17(%arg0: i32) -> (i32, i32, i32) {
    %c0_i32 = arith.constant 0 : i32
    %c0_i32_0 = arith.constant 0 : i32
    %c0_i32_1 = arith.constant 0 : i32
    %c0_i32_2 = arith.constant 0 : i32
    return %c0_i32, %c0_i32_0, %c0_i32_1 : i32, i32, i32
  }
  func.func @transform_18(%arg0: i32) -> (i32, i32) {
    %c0_i32 = arith.constant 0 : i32
    %c0_i32_0 = arith.constant 0 : i32
    %c0_i32_1 = arith.constant 0 : i32
    return %c0_i32, %c0_i32_0 : i32, i32
  }
  func.func @transform_19(%arg0: i32) -> (i32, i32) {
    %c0_i32 = arith.constant 0 : i32
    %c0_i32_0 = arith.constant 0 : i32
    %c0_i32_1 = arith.constant 0 : i32
    return %c0_i32, %c0_i32_0 : i32, i32
  }
  func.func @transform_20(%arg0: i32) -> (i32, i32) {
    %c0_i32 = arith.constant 0 : i32
    %c0_i32_0 = arith.constant 0 : i32
    %c0_i32_1 = arith.constant 0 : i32
    return %c0_i32, %c0_i32_0 : i32, i32
  }
}

</mosaic_0001>

<bundles_post_ra>
// kernel: rc_model_forward.1
= control target key start
LH: loop header
LB: loop body
LE: loop exit
PB: predicated region body
PF: predicated region fallthrough
CT: control target
= control target key end

     0   :  { %s4716_s0 = inlined_call_operand.vmem [shape: s32[16,1], index: 0, kind: input, shape index: {}]   ;;  %s4717_s1 = inlined_call_operand.vmem [shape: bf16[64,128], index: 1, kind: input, shape index: {}]   ;;  %s4718_s2 = inlined_call_operand.vmem [shape: f32[8,128], index: 2, kind: input, shape index: {}]   ;;  %s4719_s3 = inlined_call_operand.vmem [shape: f32[2,128], index: 3, kind: input, shape index: {}]   ;;  %s4720_s4 = inlined_call_operand.hbm [shape: f32[1,128], index: 4, kind: input, shape index: {}]   ;;  %s4721_s5 = inlined_call_operand.hbm [shape: f32[1,128], index: 5, kind: input, shape index: {}]   ;;  %s4722_s6 = inlined_call_operand.hbm [shape: bf16[2,128,384], index: 6, kind: input, shape index: {}]   ;;  %s4723_s7 = inlined_call_operand.vmem [shape: f32[2,1,384], index: 7, kind: input, shape index: {}]   ;;  %s4724_s8 = inlined_call_operand.hbm [shape: bf16[2,128,128], index: 8, kind: input, shape index: {}]   ;;  %s4725_s9 = inlined_call_operand.hbm [shape: f32[2,1,128], index: 9, kind: input, shape index: {}]   ;;  %s4726_s10 = inlined_call_operand.hbm [shape: f32[2,1,128], index: 10, kind: input, shape index: {}]   ;;  %s4727_s11 = inlined_call_operand.hbm [shape: f32[2,1,128], index: 11, kind: input, shape index: {}]   ;;  %s4728_s12 = inlined_call_operand.hbm [shape: bf16[2,128,256], index: 12, kind: input, shape index: {}]   ;;  %s4729_s13 = inlined_call_operand.hbm [shape: f32[2,1,256], index: 13, kind: input, shape index: {}]   ;;  %s4730_s14 = inlined_call_operand.hbm [shape: bf16[2,256,128], index: 14, kind: input, shape index: {}]   ;;  %s4731_s15 = inlined_call_operand.hbm [shape: f32[2,1,128], index: 15, kind: input, shape index: {}]   ;;  %s4732_s16 = inlined_call_operand.hbm [shape: f32[2,1,128], index: 16, kind: input, shape index: {}]   ;;  %s4733_s17 = inlined_call_operand.hbm [shape: f32[2,1,128], index: 17, kind: input, shape index: {}]   ;;  %s4734_s18 = inlined_call_operand.hbm [shape: bf16[128,128], index: 18, kind: input, shape index: {}]   ;;  %s4735_s19 = inlined_call_operand.hbm [shape: f32[1,128], index: 19, kind: input, shape index: {}]   ;;  %s4736_s20 = inlined_call_operand.vmem [shape: f32[8,128], index: 20, kind: output, shape index: {}]  }
   0x1   :  { %4739 = sst [smem:[#allocation33_spill]] %s4716_s0 }
   0x2   :  { %4740 = sst [smem:[#allocation34_spill]] %s4717_s1 }
   0x3   :  { %4741 = sst [smem:[#allocation35_spill]] %s4718_s2 }
   0x4   :  { %4742 = sst [smem:[#allocation36_spill]] %s4719_s3 }
   0x5   :  { %4743 = sst [smem:[#allocation37_spill]] %s4720_s4 }
   0x6   :  { %25 = vsyncpa [#allocation3], 0 }
   0x7   :  { %26 = vsyncpa [#allocation5], 0 }
   0x8   :  { %27 = vsyncpa [#allocation8], 0 }
   0x9   :  { %28 = vsyncpa [#allocation11], 0 }
   0xa   :  { %29 = vsyncpa [#allocation14], 0 }
   0xb   :  { %30 = vsyncpa [#allocation17], 0 }
   0xc   :  { %31 = vsyncpa [#allocation20], 0 }
   0xd   :  { %32 = vsyncpa [#allocation23], 0  ;;  %s4215_s1 = smov [#allocation4]   ;;  %s4216_s23 = smov [#allocation7]  }
   0xe   :  { %s57_s22 = sshll.u32 %s4215_s1, 4  ;;  %s80_s24 = sshll.u32 %s4216_s23, 4  ;;  %s58_s22 = int_to_ptr.vmem [resolvable:$true] %s57_s22  ;;  %s81_s24 = int_to_ptr.vmem [resolvable:$true] %s80_s24 }
   0xf   :  { %s3907_s2 = scalar_lea.vmem %s58_s22, 16  ;;  %s3911_s25 = scalar_lea.vmem %s58_s22, 32 }
  0x10   :  { %p3908_p0 = scmp.ne.s32.totalorder %s58_s22, %s3907_s2  ;;  %p3912_p1 = scmp.lt.s32.totalorder %s58_s22, %s58_s22 }
  0x11   :  { %p3913_p2 = scmp.lt.s32.totalorder %s3911_s25, %s3907_s2 }
  0x13   :  { %p3914_p3 = por %p3913_p2, %p3912_p1 }
  0x15   :  { %p3915_p4 = pnand %p3914_p3, %p3908_p0 }
  0x17   :  { %3918 = shalt.err (!%p3915_p4)
}
  0x18   :  { %60 = dma.hbm_to_vmem [thread:$0]  %s4721_s5, 16, %s58_s22, [#allocation5]  }
  0x19   :  { %s3927_s27 = scalar_lea.vmem %s81_s24, 2048  ;;  %p3932_p6 = scmp.lt.s32.totalorder %s81_s24, %s81_s24 }
  0x1a   :  { %p3928_p5 = scmp.ne.s32.totalorder %s81_s24, %s3927_s27  ;;  %p3933_p7 = scmp.lt.s32.totalorder %s3927_s27, %s3927_s27 }
  0x1c   :  { %p3934_p8 = por %p3933_p7, %p3932_p6 }
  0x1e   :  { %p3935_p9 = pnand %p3934_p8, %p3928_p5 }
  0x20   :  { %3938 = shalt.err (!%p3935_p9)
}
  0x21   :  { %s4217_s28 = smov 64   ;;  %s4218_s4 = smov 4  }
  0x22   :  { %86 = dma.hbm_to_vmem [thread:$0]  %s4724_s8, 2048, %s81_s24, [#allocation8], %s4217_s28, %s4217_s28, %s4218_s4  }
  0x23   :  { %s4219_s0 = smov [#allocation10]   ;;  %s4220_s1 = smov [#allocation13]  }
  0x24   :  { %s104_s21 = sshll.u32 %s4219_s0, 4  ;;  %s128_s5 = sshll.u32 %s4220_s1, 4  ;;  %s105_s21 = int_to_ptr.vmem [resolvable:$true] %s104_s21  ;;  %s129_s5 = int_to_ptr.vmem [resolvable:$true] %s128_s5 }
  0x25   :  { %s3947_s22 = scalar_lea.vmem %s105_s21, 32  ;;  %p3952_p11 = scmp.lt.s32.totalorder %s105_s21, %s105_s21 }
  0x26   :  { %p3948_p10 = scmp.ne.s32.totalorder %s105_s21, %s3947_s22  ;;  %p3953_p12 = scmp.lt.s32.totalorder %s3947_s22, %s3947_s22 }
  0x28   :  { %p3954_p13 = por %p3953_p12, %p3952_p11 }
  0x2a   :  { %p3955_p0 = pnand %p3954_p13, %p3948_p10 }
  0x2c   :  { %3958 = shalt.err (!%p3955_p0)
}
  0x2d   :  { %s4221_s23 = smov 16   ;;  %s4222_s2 = smov 1  }
  0x2e   :  { %110 = dma.hbm_to_vmem [thread:$0]  %s4726_s10, 32, %s105_s21, [#allocation11], %s4221_s23, %s4221_s23, %s4222_s2  }
  0x2f   :  { %s3967_s24 = scalar_lea.vmem %s129_s5, 4096  ;;  %p3972_p2 = scmp.lt.s32.totalorder %s129_s5, %s129_s5 }
  0x30   :  { %p3968_p1 = scmp.ne.s32.totalorder %s129_s5, %s3967_s24  ;;  %p3973_p3 = scmp.lt.s32.totalorder %s3967_s24, %s3967_s24 }
  0x32   :  { %p3974_p4 = por %p3973_p3, %p3972_p2 }
  0x34   :  { %p3975_p5 = pnand %p3974_p4, %p3968_p1 }
  0x36   :  { %3978 = shalt.err (!%p3975_p5)
}
  0x37   :  { %s4223_s3 = smov 128   ;;  %s4224_s26 = smov 8  }
  0x38   :  { %134 = dma.hbm_to_vmem [thread:$0]  %s4728_s12, 4096, %s129_s5, [#allocation14], %s4223_s3, %s4223_s3, %s4224_s26  }
  0x39   :  { %s4225_s30 = smov [#allocation16]   ;;  %s4226_s1 = smov [#allocation19]  }
  0x3a   :  { %s152_s0 = sshll.u32 %s4225_s30, 4  ;;  %s176_s22 = sshll.u32 %s4226_s1, 4  ;;  %s153_s0 = int_to_ptr.vmem [resolvable:$true] %s152_s0  ;;  %s177_s22 = int_to_ptr.vmem [resolvable:$true] %s176_s22 }
  0x3b   :  { %s3987_s10 = scalar_lea.vmem %s153_s0, 4096  ;;  %p3992_p7 = scmp.lt.s32.totalorder %s153_s0, %s153_s0 }
  0x3c   :  { %p3988_p6 = scmp.ne.s32.totalorder %s153_s0, %s3987_s10  ;;  %p3993_p8 = scmp.lt.s32.totalorder %s3987_s10, %s3987_s10 }
  0x3e   :  { %p3994_p9 = por %p3993_p8, %p3992_p7 }
  0x40   :  { %p3995_p10 = pnand %p3994_p9, %p3988_p6 }
  0x42   :  { %3998 = shalt.err (!%p3995_p10)
}
  0x43   :  { %158 = dma.hbm_to_vmem [thread:$0]  %s4730_s14, 4096, %s153_s0, [#allocation17], %s4217_s28, %s4217_s28, %s4218_s4  }
  0x44   :  { %s4007_s12 = scalar_lea.vmem %s177_s22, 32  ;;  %p4012_p12 = scmp.lt.s32.totalorder %s177_s22, %s177_s22 }
  0x45   :  { %p4008_p11 = scmp.ne.s32.totalorder %s177_s22, %s4007_s12  ;;  %p4013_p13 = scmp.lt.s32.totalorder %s4007_s12, %s4007_s12 }
  0x47   :  { %p4014_p0 = por %p4013_p13, %p4012_p12 }
  0x49   :  { %p4015_p1 = pnand %p4014_p0, %p4008_p11 }
  0x4b   :  { %4018 = shalt.err (!%p4015_p1)
}
  0x4c   :  { %182 = dma.hbm_to_vmem [thread:$0]  %s4732_s16, 32, %s177_s22, [#allocation20], %s4221_s23, %s4221_s23, %s4222_s2  }
  0x4d   :  { %s4227_s24 = smov [#allocation22]   ;;  %s4228_s26 = smov [#allocation2]  }
  0x4e   :  { %s200_s3 = sshll.u32 %s4227_s24, 4  ;;  %s47_s27 = sshll.u32 %s4228_s26, 4  ;;  %s201_s3 = int_to_ptr.vmem [resolvable:$true] %s200_s3  ;;  %s48_s27 = int_to_ptr.vmem [resolvable:$true] %s47_s27 }
  0x4f   :  { %s4027_s14 = scalar_lea.vmem %s201_s3, 1024  ;;  %p4032_p3 = scmp.lt.s32.totalorder %s201_s3, %s201_s3 }
  0x50   :  { %p4028_p2 = scmp.ne.s32.totalorder %s201_s3, %s4027_s14  ;;  %p4033_p4 = scmp.lt.s32.totalorder %s4027_s14, %s4027_s14 }
  0x52   :  { %p4034_p5 = por %p4033_p4, %p4032_p3 }
  0x54   :  { %p4035_p6 = pnand %p4034_p5, %p4028_p2 }
  0x56   :  { %4038 = shalt.err (!%p4035_p6)
}
  0x57   :  { %206 = dma.hbm_to_vmem [thread:$0]  %s4734_s18, 1024, %s201_s3, [#allocation23], %s4217_s28, %s4217_s28, %s4218_s4  }
  0x58   :  { %s4047_s16 = scalar_lea.vmem %s48_s27, 16  ;;  %s4051_s0 = scalar_lea.vmem %s48_s27, 32 }
  0x59   :  { %p4048_p7 = scmp.ne.s32.totalorder %s48_s27, %s4047_s16  ;;  %p4052_p8 = scmp.lt.s32.totalorder %s48_s27, %s48_s27 }
  0x5a   :  { %p4053_p9 = scmp.lt.s32.totalorder %s4051_s0, %s4047_s16 }
  0x5c   :  { %p4054_p10 = por %p4053_p9, %p4052_p8 }
  0x5e   :  { %p4055_p11 = pnand %p4054_p10, %p4048_p7 }
  0x60   :  { %4058 = shalt.err (!%p4055_p11)
}
  0x61   :  { %s4744_s10 = sld [smem:[#allocation37_spill]]  ;;  %s4229_s21 = smov [#allocation6]  }
  0x62   :  { %s66_s25 = sshll.u32 %s4229_s21, 4  ;;  %s67_s25 = int_to_ptr.vmem [resolvable:$true] %s66_s25 }
  0x63   :  { %s4067_s12 = scalar_lea.vmem %s67_s25, 6144  ;;  %p4072_p13 = scmp.lt.s32.totalorder %s67_s25, %s67_s25 }
  0x64   :  { %p4068_p12 = scmp.ne.s32.totalorder %s67_s25, %s4067_s12  ;;  %p4073_p0 = scmp.lt.s32.totalorder %s4067_s12, %s4067_s12 }
  0x66   :  { %p4074_p1 = por %p4073_p0, %p4072_p13 }
  0x67   :  { %50 = dma.hbm_to_vmem [thread:$0]  %s4744_s10, 16, %s48_s27, [#allocation3]  }
  0x68   :  { %p4075_p2 = pnand %p4074_p1, %p4068_p12 }
  0x6a   :  { %4078 = shalt.err (!%p4075_p2)
}
  0x6b   :  { %s4230_s18 = smov 192   ;;  %s4231_s4 = smov 12  }
  0x6c   :  { %72 = dma.hbm_to_vmem [thread:$0]  %s4722_s6, 6144, %s67_s25, [#allocation5], %s4230_s18, %s4230_s18, %s4231_s4  }
  0x6d   :  { %s4232_s24 = smov [#allocation9]   ;;  %s4233_s26 = smov [#allocation12]  }
  0x6e   :  { %s92_s3 = sshll.u32 %s4232_s24, 4  ;;  %s116_s27 = sshll.u32 %s4233_s26, 4  ;;  %s93_s3 = int_to_ptr.vmem [resolvable:$true] %s92_s3  ;;  %s117_s27 = int_to_ptr.vmem [resolvable:$true] %s116_s27 }
  0x6f   :  { %s4087_s14 = scalar_lea.vmem %s93_s3, 32  ;;  %p4092_p4 = scmp.lt.s32.totalorder %s93_s3, %s93_s3 }
  0x70   :  { %p4088_p3 = scmp.ne.s32.totalorder %s93_s3, %s4087_s14  ;;  %p4093_p5 = scmp.lt.s32.totalorder %s4087_s14, %s4087_s14 }
  0x72   :  { %p4094_p6 = por %p4093_p5, %p4092_p4 }
  0x74   :  { %p4095_p7 = pnand %p4094_p6, %p4088_p3 }
  0x76   :  { %4098 = shalt.err (!%p4095_p7)
}
  0x77   :  { %98 = dma.hbm_to_vmem [thread:$0]  %s4725_s9, 32, %s93_s3, [#allocation8], %s4221_s23, %s4221_s23, %s4222_s2  }
  0x78   :  { %s4107_s6 = scalar_lea.vmem %s117_s27, 32  ;;  %p4112_p9 = scmp.lt.s32.totalorder %s117_s27, %s117_s27 }
  0x79   :  { %p4108_p8 = scmp.ne.s32.totalorder %s117_s27, %s4107_s6  ;;  %p4113_p10 = scmp.lt.s32.totalorder %s4107_s6, %s4107_s6 }
  0x7b   :  { %p4114_p11 = por %p4113_p10, %p4112_p9 }
  0x7d   :  { %p4115_p12 = pnand %p4114_p11, %p4108_p8 }
  0x7f   :  { %4118 = shalt.err (!%p4115_p12)
}
  0x80   :  { %122 = dma.hbm_to_vmem [thread:$0]  %s4727_s11, 32, %s117_s27, [#allocation11], %s4221_s23, %s4221_s23, %s4222_s2  }
  0x81   :  { %s4234_s1 = smov [#allocation15]  }
  0x82   :  { %s140_s22 = sshll.u32 %s4234_s1, 4  ;;  %s141_s22 = int_to_ptr.vmem [resolvable:$true] %s140_s22 }
  0x83   :  { %s4127_s10 = scalar_lea.vmem %s141_s22, 64  ;;  %p4132_p0 = scmp.lt.s32.totalorder %s141_s22, %s141_s22 }
  0x84   :  { %p4128_p13 = scmp.ne.s32.totalorder %s141_s22, %s4127_s10  ;;  %p4133_p1 = scmp.lt.s32.totalorder %s4127_s10, %s4127_s10 }
  0x86   :  { %p4134_p2 = por %p4133_p1, %p4132_p0 }
  0x88   :  { %p4135_p3 = pnand %p4134_p2, %p4128_p13 }
  0x8a   :  { %4138 = shalt.err (!%p4135_p3)
}
  0x8b   :  { %s4235_s9 = smov 32   ;;  %s4236_s21 = smov 2  }
  0x8c   :  { %146 = dma.hbm_to_vmem [thread:$0]  %s4729_s13, 64, %s141_s22, [#allocation14], %s4235_s9, %s4235_s9, %s4236_s21  }
  0x8d   :  { %s4237_s18 = smov [#allocation18]   ;;  %s4238_s5 = smov [#allocation21]  }
  0x8e   :  { %s164_s4 = sshll.u32 %s4237_s18, 4  ;;  %s188_s11 = sshll.u32 %s4238_s5, 4  ;;  %s165_s4 = int_to_ptr.vmem [resolvable:$true] %s164_s4  ;;  %s189_s11 = int_to_ptr.vmem [resolvable:$true] %s188_s11 }
  0x8f   :  { %s4147_s8 = scalar_lea.vmem %s165_s4, 32  ;;  %p4152_p5 = scmp.lt.s32.totalorder %s165_s4, %s165_s4 }
  0x90   :  { %p4148_p4 = scmp.ne.s32.totalorder %s165_s4, %s4147_s8  ;;  %p4153_p6 = scmp.lt.s32.totalorder %s4147_s8, %s4147_s8 }
  0x92   :  { %p4154_p7 = por %p4153_p6, %p4152_p5 }
  0x94   :  { %p4155_p8 = pnand %p4154_p7, %p4148_p4 }
  0x96   :  { %4158 = shalt.err (!%p4155_p8)
}
  0x97   :  { %170 = dma.hbm_to_vmem [thread:$0]  %s4731_s15, 32, %s165_s4, [#allocation17], %s4221_s23, %s4221_s23, %s4222_s2  }
  0x98   :  { %s4167_s13 = scalar_lea.vmem %s189_s11, 32  ;;  %p4172_p10 = scmp.lt.s32.totalorder %s189_s11, %s189_s11 }
  0x99   :  { %p4168_p9 = scmp.ne.s32.totalorder %s189_s11, %s4167_s13  ;;  %p4173_p11 = scmp.lt.s32.totalorder %s4167_s13, %s4167_s13 }
  0x9b   :  { %p4174_p12 = por %p4173_p11, %p4172_p10 }
  0x9d   :  { %p4175_p13 = pnand %p4174_p12, %p4168_p9 }
  0x9f   :  { %4178 = shalt.err (!%p4175_p13)
}
  0xa0   :  { %194 = dma.hbm_to_vmem [thread:$0]  %s4733_s17, 32, %s189_s11, [#allocation20], %s4221_s23, %s4221_s23, %s4222_s2  }
  0xa1   :  { %s4239_s14 = smov [#allocation24]  }
  0xa2   :  { %s213_s29 = sshll.u32 %s4239_s14, 4  ;;  %s214_s29 = int_to_ptr.vmem [resolvable:$true] %s213_s29 }
  0xa3   :  { %s4187_s30 = scalar_lea.vmem %s214_s29, 16  ;;  %s4191_s15 = scalar_lea.vmem %s214_s29, 32 }
  0xa4   :  { %p4188_p0 = scmp.ne.s32.totalorder %s214_s29, %s4187_s30  ;;  %p4192_p1 = scmp.lt.s32.totalorder %s214_s29, %s214_s29 }
  0xa5   :  { %p4193_p2 = scmp.lt.s32.totalorder %s4191_s15, %s4187_s30 }
  0xa7   :  { %p4194_p3 = por %p4193_p2, %p4192_p1 }
  0xa9   :  { %p4195_p4 = pnand %p4194_p3, %p4188_p0 }
  0xab   :  { %4198 = shalt.err (!%p4195_p4)
}
  0xac   :  { %216 = dma.hbm_to_vmem [thread:$0]  %s4735_s19, 16, %s214_s29, [#allocation23]  }
  0xad   :  { %4199 = dma.done.wait [#allocation3], 16  }
  0xae   :  { %4200 = vsyncadd [#allocation3], 4294967280 }
  0xaf   :  { %4201 = dma.done.wait [#allocation5], 6160  }
  0xb0   :  { %4202 = vsyncadd [#allocation5], 4294961136 }
  0xb1   :  { %4203 = dma.done.wait [#allocation8], 2080  }
  0xb2   :  { %4204 = vsyncadd [#allocation8], 4294965216 }
  0xb3   :  { %4205 = dma.done.wait [#allocation11], 64  }
  0xb4   :  { %4206 = vsyncadd [#allocation11], 4294967232 }
  0xb5   :  { %4207 = dma.done.wait [#allocation14], 4160  }
  0xb6   :  { %4208 = vsyncadd [#allocation14], 4294963136 }
  0xb7   :  { %4209 = dma.done.wait [#allocation17], 4128  }
  0xb8   :  { %4210 = vsyncadd [#allocation17], 4294963168 }
  0xb9   :  { %4211 = dma.done.wait [#allocation20], 64  }
  0xba   :  { %4212 = vsyncadd [#allocation20], 4294967232 }
  0xbb   :  { %4213 = dma.done.wait [#allocation23], 1040  }
  0xbc   :  { %4214 = vsyncadd [#allocation23], 4294966256  ;;  %v4240_v0 = vmov 0   ;;  %v4241_v1 = vmov 0.0   ;;  %s4745_s23 = sld [smem:[#allocation33_spill]]  ;;  %vm4242_vm0 = vmmov 0   ;;  %v265_v8 = vlaneseq }
  0xbd   :  { %3644 = vset.pattern.permute.xlu0 %v4240_v0  ;;  %3408 = vmatprep.subr.bf16.mxu0 %v4241_v1  ;;  %s4746_s1 = sld [smem:[#allocation34_spill]]  ;;  %vm311_vm3 = vcmask 523264   ;;  %v3659_v25 = vld [vmem:[#allocation6 + $0xac] ss:$12 sps:$4 sm:$0xff]   ;;  %v3661_v26 = vld [vmem:[#allocation6 + $0xa8] ss:$12 sps:$4 sm:$0xff]  }
  0xbe   :  { %614 = vmatprep.mubr.bf16.mxu1 %v4240_v0  ;;  %3416 = vmatprep.mubr.msk.bf16.mxu0 %vm4242_vm0, %v4241_v1  ;;  %v266_v9 = vand.u32 127, %v265_v8  ;;  %s4747_s8 = sld [smem:[#allocation35_spill]]  ;;  %v3662_v27 = vld [vmem:[#allocation6 + $0xb0] ss:$12 sps:$4 sm:$0xff]   ;;  %v3663_v36 = vld [vmem:[#allocation6 + $0x94] ss:$12 sps:$4 sm:$0xff]  }
  0xbf   :  { %s4748_s13 = sld [smem:[#allocation36_spill]]  ;;  %582 = vmatprep.subr.bf16.mxu1 %v3659_v25  ;;  %v3665_v37 = vld [vmem:[#allocation6 + $0x90] ss:$12 sps:$4 sm:$0xff]   ;;  %v3666_v38 = vld [vmem:[#allocation6 + $0x98] ss:$12 sps:$4 sm:$0xff]   ;;  %vm915_vm4 = vcmask 1043456  }
  0xc0   :  { %583 = vmatpush1.bf16.msra.mxu1 %v3661_v26  ;;  %v3667_v39 = vld [vmem:[#allocation6 + $0x7c] ss:$12 sps:$4 sm:$0xff]   ;;  %v3669_v40 = vld [vmem:[#allocation6 + $0x78] ss:$12 sps:$4 sm:$0xff]   ;;  %v3670_v41 = vld [vmem:[#allocation6 + $0x80] ss:$12 sps:$4 sm:$0xff]  }
  0xc1   :  { %584 = vmatprep.subr.bf16.mxu1 %v3663_v36  ;;  %v3671_v42 = vld [vmem:[#allocation6 + $0x64] ss:$12 sps:$4 sm:$0xff]   ;;  %v3673_v43 = vld [vmem:[#allocation6 + $0x60] ss:$12 sps:$4 sm:$0xff]   ;;  %v3674_v44 = vld [vmem:[#allocation6 + $0x68] ss:$12 sps:$4 sm:$0xff]  }
  0xc2   :  { %v263_v2 = vld [vmem:[%s4745_s23] sm:$0xff]  ;;  %v264_v4 = vld [vmem:[%s4745_s23 + $0x8] sm:$0xff]  ;;  %v3675_v45 = vld [vmem:[#allocation6 + $0x4c] ss:$12 sps:$4 sm:$0xff]   ;;  %vm865_vm5 = vcmask 64512   ;;  %vm2969_vm6 = vcmask 1040384  }
  0xc3   :  { %268 = vperm.xlu0 %3644, %v263_v2   ;;  %v3655_v3 = vld [vmem:[%s4746_s1 + $0x18] sm:$0xff]   ;;  %v3656_v5 = vld [vmem:[%s4746_s1 + $0x10] sm:$0xff]   ;;  %v3657_v6 = vld [vmem:[%s4746_s1 + $0x8] sm:$0xff]   ;;  %vm2971_vm7 = vcmask 1041408  }
  0xc4   :  { %3409 = vmatpush3.bf16.msra.mxu0 %v3655_v3  ;;  %v3658_v7 = vld [vmem:[%s4746_s1] sm:$0xff]   ;;  %585 = vmatpush1.bf16.msra.mxu1 %v3665_v37  ;;  %v3677_v46 = vld [vmem:[#allocation6 + $0x48] ss:$12 sps:$4 sm:$0xff]   ;;  %v3682_v50 = vld [vmem:[#allocation6 + $0x38] ss:$12 sps:$4 sm:$0xff]  }
  0xc5   :  { %3410 = vmatprep.subr.bf16.mxu0 %v4241_v1  ;;  %v286_v15 = vld [vmem:[%s4747_s8] sm:$0xff]  ;;  %586 = vmatprep.subr.bf16.mxu1 %v3667_v39  ;;  %v3685_v52 = vld [vmem:[#allocation6 + $0x18] ss:$12 sps:$4 sm:$0xff]   ;;  %v3690_v56 = vld [vmem:[#allocation6 + $0x8] ss:$12 sps:$4 sm:$0xff]  }
  0xc6   :  { %v3109_v17 = vld [vmem:[%s4748_s13] ss:$0 sm:$0xff]  ;;  %v3679_v48 = vld [vmem:[#allocation6 + $0x34] ss:$12 sps:$4 sm:$0xff]   ;;  %v3687_v54 = vld [vmem:[#allocation6 + $0x4] ss:$12 sps:$4 sm:$0xff]  }
  0xc7   :  { %271 = vperm.xlu0 %3644, %v264_v4   ;;  %v3678_v47 = vld [vmem:[#allocation6 + $0x50] ss:$12 sps:$4 sm:$0xff]   ;;  %v3686_v53 = vld [vmem:[#allocation6 + $0x20] ss:$12 sps:$4 sm:$0xff]   ;;  %vm3278_vm8 = vmpackc.low %vm2971_vm7, %vm2971_vm7 }
  0xc8   :  { %3411 = vmatpush3.bf16.msra.mxu0 %v3656_v5  ;;  %587 = vmatpush1.bf16.msra.mxu1 %v3669_v40  ;;  %v3681_v49 = vld [vmem:[#allocation6 + $0x30] ss:$12 sps:$4 sm:$0xff]   ;;  %v3689_v55 = vld [vmem:[#allocation6] ss:$12 sps:$4 sm:$0xff]  }
  0xc9   :  { %3412 = vmatprep.subr.bf16.mxu0 %v4241_v1  ;;  %588 = vmatprep.subr.bf16.mxu1 %v3671_v42  ;;  %v3683_v51 = vld [vmem:[#allocation6 + $0x1c] ss:$12 sps:$4 sm:$0xff]  }
  0xca   :  { %v3110_v3 = vld [vmem:[#allocation2] ss:$0 sm:$0xff] }
  0xcc   :  { %3413 = vmatpush3.bf16.msra.mxu0 %v3657_v6  ;;  %589 = vmatpush1.bf16.msra.mxu1 %v3673_v43 }
  0xcd   :  { %3414 = vmatprep.subr.bf16.mxu0 %v4241_v1  ;;  %590 = vmatprep.subr.bf16.mxu1 %v3675_v45 }
  0xd0   :  { %3415 = vmatpush3.bf16.msra.mxu0 %v3658_v7  ;;  %591 = vmatpush1.bf16.msra.mxu1 %v3677_v46  ;;  %v3111_v7 = vld [vmem:[#allocation4] ss:$0 sm:$0xff] }
  0xd1   :  { %3420 = vmatprep.subr.bf16.mxu0 %v4241_v1  ;;  %592 = vmatprep.subr.bf16.mxu1 %v3679_v48 }
  0xd4   :  { %593 = vmatpush1.bf16.msra.mxu1 %v3681_v49 }
  0xd5   :  { %594 = vmatprep.subr.bf16.mxu1 %v3683_v51 }
  0xd8   :  { %595 = vmatpush1.bf16.msra.mxu1 %v3685_v52 }
  0xd9   :  { %596 = vmatprep.subr.bf16.mxu1 %v3687_v54 }
  0xdc   :  { %597 = vmatpush1.bf16.msra.mxu1 %v3689_v55 }
  0xdd   :  { %3440 = vmatprep.subr.bf16.mxu1 %v4241_v1 }
 0x13e   :  { %v269_v10 = vpop.permute.xlu0 %268 }
 0x13f   :  { %vm273_vm1 = vcmp.eq.s32.totalorder %v269_v10, %v266_v9 }
 0x140   :  { %v275_v12 = vsel %vm273_vm1, 1.0, %v4241_v1 }
 0x142   :  { %v272_v11 = vpop.permute.xlu0 %271 }
 0x143   :  { %vm274_vm2 = vcmp.eq.s32.totalorder %v272_v11, %v266_v9 }
 0x144   :  { %v276_v13 = vsel %vm274_vm2, 1.0, %v4241_v1 }
 0x145   :  { %v277_v14 = vpack.c.bf16 %v276_v13, %v275_v12  ;;  %v4489_v13 = vshrl.u32 %v265_v8, 7 }
 0x147   :  { %3417 = vmatmul.mubr.msk.bf16.vlgmr.msra.gmra.mxu0 %vm311_vm3, %v277_v14  ;;  %v4492_v14 = vsub.s32 1, %v4489_v13  ;;  %v449_v26 = vsub.s32 2, %v4489_v13 }
 0x148   :  { %3436 = vmatprep.mubr.msk.bf16.mxu0 %vm4242_vm0, %v4241_v1  ;;  %3421 = vmatpush3.bf16.msra.mxu0 %v3662_v27 }
 0x149   :  { %3422 = vmatprep.subr.bf16.mxu0 %v4241_v1 }
 0x14c   :  { %3423 = vmatpush3.bf16.msra.mxu0 %v3666_v38 }
 0x14d   :  { %3424 = vmatprep.subr.bf16.mxu0 %v4241_v1 }
 0x150   :  { %3425 = vmatpush3.bf16.msra.mxu0 %v3670_v41 }
 0x151   :  { %3426 = vmatprep.subr.bf16.mxu0 %v4241_v1 }
 0x154   :  { %3427 = vmatpush3.bf16.msra.mxu0 %v3674_v44 }
 0x155   :  { %3428 = vmatprep.subr.bf16.mxu0 %v4241_v1 }
 0x158   :  { %3429 = vmatpush3.bf16.msra.mxu0 %v3678_v47 }
 0x159   :  { %3430 = vmatprep.subr.bf16.mxu0 %v4241_v1 }
 0x15c   :  { %3431 = vmatpush3.bf16.msra.mxu0 %v3682_v50 }
 0x15d   :  { %3432 = vmatprep.subr.bf16.mxu0 %v4241_v1 }
 0x160   :  { %3433 = vmatpush3.bf16.msra.mxu0 %v3686_v53 }
 0x161   :  { %3434 = vmatprep.subr.bf16.mxu0 %v4241_v1 }
 0x164   :  { %3435 = vmatpush3.bf16.msra.mxu0 %v3690_v56 }
 0x165   :  { %3452 = vmatprep.subr.bf16.mxu0 %v4241_v1 }
 0x207   :  { %v349_v16 = vpop.f32.mrf.mxu0 }
 0x208   :  { %v350_v18 = vadd.f32 %v349_v16, %v286_v15 }
 0x209   :  { %v3418_v19 = vpop.f32.mrf.mxu0 }
 0x20a   :  { %v361_v20 = vadd.f32 %v3109_v17, %v350_v18 }
 0x20b   :  { %v352_v21 = vpop.f32.mrf.mxu0 }
 0x20c   :  { %v353_v22 = vadd.f32 %v352_v21, %v286_v15  ;;  %365 = vadd.xlane.f32.xlu1 %v361_v20 }
 0x20d   :  { %v3419_v23 = vpop.f32.mrf.mxu0 }
 0x20e   :  { %v362_v24 = vadd.f32 %v3109_v17, %v353_v22  ;;  %v437_v17 = vld [vmem:[%s4723_s7] sm:$0x7] }
 0x20f   :  { %v446_v21 = vrot.slane %v437_v17, %v4492_v14 }
 0x210   :  { %367 = vadd.xlane.f32.xlu1 %v362_v24 }
 0x295   :  { %v366_v28 = vpop.xlane.xlu1 %365 }
 0x296   :  { %v370_v29 = vmul.f32 0.0078125, %v366_v28 }
 0x298   :  { %v4460_v30 = vsub.f32 %v361_v20, %v370_v29  ;;  %v4498_v20 = vsub.s32 0, %v4489_v13 }
 0x299   :  { %v368_v31 = vpop.xlane.xlu1 %367 }
 0x29a   :  { %v371_v32 = vmul.f32 0.0078125, %v368_v31  ;;  %v374_v33 = vmul.f32 %v4460_v30, %v4460_v30  ;;  %v442_v25 = vrot.slane %v437_v17, %v4498_v20 }
 0x29c   :  { %v4464_v34 = vsub.f32 %v362_v24, %v371_v32  ;;  %376 = vadd.xlane.f32.xlu0 %v374_v33  ;;  %v450_v32 = vrot.slane %v437_v17, %v449_v26 }
 0x29e   :  { %v375_v35 = vmul.f32 %v4464_v34, %v4464_v34 }
 0x2a0   :  { %378 = vadd.xlane.f32.xlu1 %v375_v35 }
 0x325   :  { %v377_v57 = vpop.xlane.xlu0 %376 }
 0x326   :  { %v380_v58 = vmul.f32 0.0078125, %v377_v57 }
 0x328   :  { %v382_v59 = vadd.f32 1e-12, %v380_v58 }
 0x329   :  { %v379_v60 = vpop.xlane.xlu1 %378 }
 0x32a   :  { %3827 = vrsqrt.f32 %v382_v59  ;;  %v381_v61 = vmul.f32 0.0078125, %v379_v60 }
 0x32c   :  { %v383_v62 = vadd.f32 1e-12, %v381_v61 }
 0x32e   :  { %3829 = vrsqrt.f32 %v383_v62 }
 0x337   :  { %v3828_v63 = vpop.eup %3827 }
 0x338   :  { %v386_v2 = vmul.f32 %v3828_v63, %v4460_v30 }
 0x33a   :  { %v394_v6 = vmul.f32 %v3110_v3, %v386_v2 }
 0x33b   :  { %v3830_v4 = vpop.eup %3829 }
 0x33c   :  { %v387_v5 = vmul.f32 %v3830_v4, %v4464_v34  ;;  %v4478_v10 = vadd.f32 %v3111_v7, %v394_v6 }
 0x33e   :  { %v395_v9 = vmul.f32 %v3110_v3, %v387_v5 }
 0x340   :  { %v4480_v11 = vadd.f32 %v3111_v7, %v395_v9 }
 0x342   :  { %v404_v12 = vpack.c.bf16 %v4480_v11, %v4478_v10 }
 0x344   :  { %615 = vmatmul.mubr.bf16.vlgmr.msra.gmra.mxu1 %v404_v12  ;;  %3437 = vmatmul.mubr.bf16.vlgmr.msra.gmra.mxu0 %v404_v12 }
 0x345   :  { %3442 = vmatprep.mubr.msk.bf16.mxu1 %vm4242_vm0, %v4241_v1  ;;  %3454 = vmatprep.mubr.msk.bf16.mxu0 %vm4242_vm0, %v4241_v1 }
 0x404   :  { %v616_v15 = vpop.f32.mrf.mxu1  ;;  %v659_v16 = vpop.f32.mrf.mxu0 }
 0x405   :  { %v617_v31 = vadd.f32 %v616_v15, %v442_v25  ;;  %v660_v38 = vadd.f32 %v659_v16, %v450_v32 }
 0x406   :  { %v618_v18 = vpop.f32.mrf.mxu1  ;;  %v3438_v19 = vpop.f32.mrf.mxu0 }
 0x407   :  { %v619_v27 = vadd.f32 %v618_v18, %v446_v21 }
 0x408   :  { %v620_v22 = vpop.f32.mrf.mxu1  ;;  %v662_v23 = vpop.f32.mrf.mxu0 }
 0x409   :  { %v621_v29 = vadd.f32 %v620_v22, %v442_v25  ;;  %v663_v36 = vadd.f32 %v662_v23, %v450_v32 }
 0x40a   :  { %v622_v8 = vpop.f32.mrf.mxu1  ;;  %v3439_v24 = vpop.f32.mrf.mxu0 }
 0x40b   :  { %v623_v28 = vadd.f32 %v622_v8, %v446_v21  ;;  %v666_v35 = vpack.c.bf16 %v621_v29, %v617_v31  ;;  %v4511_v39 = vpack.c.bf16 %v663_v36, %v660_v38 }
 0x40d   :  { %v667_v30 = vpack.c.bf16 %v623_v28, %v619_v27  ;;  %v767_v40 = vrot.slane %v666_v35, 4  ;;  %v917_v41 = vsel %vm915_vm4, %v4511_v39, 0  ;;  %v1015_v6 = vrot.slane %v4511_v39, 4 }
 0x40f   :  { %719 = vrot.lane.b32.xlu1 %v667_v30, %s4217_s28  ;;  %v673_v33 = vsel %vm311_vm3, %v667_v30, 0  ;;  %v768_v34 = vrot.slane %v667_v30, 4 }
 0x410   :  { %3441 = vmatpush3.bf16.xpose.msra.mxu1 %v673_v33 }
 0x411   :  { %v773_v37 = vsel %vm311_vm3, %v768_v34, 0  ;;  %3446 = vmatprep.subr.bf16.mxu1 %v4241_v1 }
 0x412   :  { %3453 = vmatpush3.bf16.xpose.msra.mxu0 %v773_v37 }
 0x413   :  { %716 = vrot.lane.b32.xlu1 %v666_v35, %s4217_s28  ;;  %3464 = vmatprep.subr.bf16.mxu0 %v4241_v1 }
 0x417   :  { %817 = vrot.lane.b32.xlu1 %v768_v34, %s4217_s28  ;;  %3443 = vmatmul.mubr.msk.bf16.vlgmr.msra.gmra.mxu1 %vm311_vm3, %v666_v35 }
 0x418   :  { %3448 = vmatprep.mubr.msk.bf16.mxu1 %vm4242_vm0, %v4241_v1 }
 0x419   :  { %3455 = vmatmul.mubr.msk.bf16.vlgmr.msra.gmra.mxu0 %vm311_vm3, %v767_v40 }
 0x41a   :  { %3465 = vmatpush3.bf16.msra.mxu0 %v917_v41  ;;  %3466 = vmatprep.mubr.msk.bf16.mxu0 %vm4242_vm0, %v4241_v1 }
 0x41b   :  { %815 = vrot.lane.b32.xlu1 %v767_v40, %s4217_s28  ;;  %3476 = vmatprep.subr.bf16.mxu0 %v4241_v1 }
 0x481   :  { %v720_v42 = vpop.permute.xlu1 %719 }
 0x482   :  { %v725_v43 = vsel %vm311_vm3, %v720_v42, 0 }
 0x483   :  { %3447 = vmatpush3.bf16.xpose.msra.mxu1 %v725_v43 }
 0x484   :  { %3458 = vmatprep.subr.bf16.mxu1 %v4241_v1 }
 0x485   :  { %v717_v44 = vpop.permute.xlu1 %716 }
 0x489   :  { %v818_v45 = vpop.permute.xlu1 %817 }
 0x48a   :  { %v823_v46 = vsel %vm311_vm3, %v818_v45, 0  ;;  %3449 = vmatmul.mubr.msk.bf16.vlgmr.msra.gmra.mxu1 %vm311_vm3, %v717_v44  ;;  %v1020_v45 = vsel %vm915_vm4, %v1015_v6, 0 }
 0x48b   :  { %3459 = vmatpush3.bf16.xpose.msra.mxu1 %v823_v46  ;;  %3460 = vmatprep.mubr.msk.bf16.mxu1 %vm4242_vm0, %v4241_v1 }
 0x48c   :  { %3470 = vmatprep.subr.bf16.mxu1 %v4241_v1 }
 0x48d   :  { %v816_v47 = vpop.permute.xlu1 %815 }
 0x492   :  { %3461 = vmatmul.mubr.msk.bf16.vlgmr.msra.gmra.mxu1 %vm311_vm3, %v816_v47 }
 0x493   :  { %3472 = vmatprep.mubr.msk.bf16.mxu1 %vm4242_vm0, %v4241_v1 }
 0x4d7   :  { %v709_v48 = vpop.f32.mrf.mxu1 }
 0x4d8   :  { %v866_v49 = vsel %vm865_vm5, %v709_v48, -inf }
 0x4d9   :  { %867 = vmax.xlane.f32.xlu0 %v866_v49  ;;  %v3444_v50 = vpop.f32.mrf.mxu1  ;;  %v809_v51 = vpop.f32.mrf.mxu0 }
 0x4da   :  { %v872_v54 = vsel %vm865_vm5, %v809_v51, -inf }
 0x4db   :  { %v712_v52 = vpop.f32.mrf.mxu1  ;;  %v3456_v53 = vpop.f32.mrf.mxu0 }
 0x4dd   :  { %v3445_v55 = vpop.f32.mrf.mxu1  ;;  %873 = vmax.xlane.f32.xlu0 %v872_v54  ;;  %v812_v56 = vpop.f32.mrf.mxu0  ;;  %v3691_v54 = vld [vmem:[#allocation7 + $0x38] sm:$0xff]  }
 0x4de   :  { %v3692_v55 = vld [vmem:[#allocation7 + $0x30] sm:$0xff]   ;;  %v3693_v56 = vld [vmem:[#allocation7 + $0x28] sm:$0xff]  }
 0x4df   :  { %v3457_v57 = vpop.f32.mrf.mxu0 }
 0x4e0   :  { %v3694_v57 = vld [vmem:[#allocation7 + $0x20] sm:$0xff]  }
 0x54a   :  { %v761_v58 = vpop.f32.mrf.mxu1 }
 0x54b   :  { %v869_v59 = vsel %vm865_vm5, %v761_v58, -inf }
 0x54c   :  { %870 = vmax.xlane.f32.xlu1 %v869_v59  ;;  %v3450_v60 = vpop.f32.mrf.mxu1  ;;  %v3696_v59 = vld [vmem:[#allocation7 + $0x10] sm:$0xff]  }
 0x54d   :  { %v3697_v60 = vld [vmem:[#allocation7 + $0x8] sm:$0xff]  }
 0x54e   :  { %v764_v61 = vpop.f32.mrf.mxu1 }
 0x550   :  { %v3451_v62 = vpop.f32.mrf.mxu1 }
 0x551   :  { %v3698_v62 = vld [vmem:[#allocation7] sm:$0xff]  }
 0x552   :  { %v859_v63 = vpop.f32.mrf.mxu1 }
 0x553   :  { %v875_v2 = vsel %vm865_vm5, %v859_v63, -inf }
 0x554   :  { %v3462_v3 = vpop.f32.mrf.mxu1  ;;  %876 = vmax.xlane.f32.xlu0 %v875_v2 }
 0x556   :  { %v862_v4 = vpop.f32.mrf.mxu1 }
 0x558   :  { %v3463_v5 = vpop.f32.mrf.mxu1 }
 0x55d   :  { %1064 = vrot.lane.b32.xlu1 %v1015_v6, %s4217_s28 }
 0x562   :  { %v868_v7 = vpop.xlane.xlu0 %867 }
 0x563   :  { %v878_v9 = vsub.f32 %v709_v48, %v868_v7 }
 0x565   :  { %v882_v12 = vmul.f32 1.442695, %v878_v9 }
 0x566   :  { %v874_v15 = vpop.xlane.xlu0 %873 }
 0x567   :  { %3831 = vpow2.f32 %v882_v12  ;;  %v880_v16 = vsub.f32 %v809_v51, %v874_v15 }
 0x569   :  { %v886_v17 = vmul.f32 1.442695, %v880_v16 }
 0x56b   :  { %3833 = vpow2.f32 %v886_v17 }
 0x574   :  { %v3832_v18 = vpop.eup %3831 }
 0x575   :  { %v890_v19 = vsel %vm865_vm5, %v3832_v18, 0.0 }
 0x576   :  { %891 = vadd.xlane.f32.xlu0 %v890_v19 }
 0x578   :  { %v3834_v21 = vpop.eup %3833 }
 0x579   :  { %v896_v22 = vsel %vm865_vm5, %v3834_v21, 0.0 }
 0x57a   :  { %897 = vadd.xlane.f32.xlu0 %v896_v22 }
 0x5d5   :  { %v871_v23 = vpop.xlane.xlu1 %870 }
 0x5d6   :  { %v879_v8 = vsub.f32 %v761_v58, %v871_v23  ;;  %v3695_v58 = vld [vmem:[#allocation7 + $0x18] sm:$0xff]  }
 0x5d8   :  { %v884_v24 = vmul.f32 1.442695, %v879_v8 }
 0x5da   :  { %3835 = vpow2.f32 %v884_v24 }
 0x5dd   :  { %v877_v25 = vpop.xlane.xlu0 %876 }
 0x5de   :  { %v881_v27 = vsub.f32 %v859_v63, %v877_v25 }
 0x5e0   :  { %v888_v28 = vmul.f32 1.442695, %v881_v27 }
 0x5e2   :  { %3837 = vpow2.f32 %v888_v28 }
 0x5e7   :  { %v3836_v29 = vpop.eup %3835 }
 0x5e8   :  { %v893_v30 = vsel %vm865_vm5, %v3836_v29, 0.0 }
 0x5e9   :  { %894 = vadd.xlane.f32.xlu0 %v893_v30 }
 0x5ef   :  { %v3838_v31 = vpop.eup %3837 }
 0x5f0   :  { %v899_v32 = vsel %vm865_vm5, %v3838_v31, 0.0 }
 0x5f1   :  { %900 = vadd.xlane.f32.xlu0 %v899_v32 }
 0x5ff   :  { %v892_v33 = vpop.xlane.xlu0 %891 }
 0x600   :  { %3839 = vrcp.f32 %v892_v33 }
 0x603   :  { %v898_v34 = vpop.xlane.xlu0 %897 }
 0x607   :  { %962 = vrot.lane.b32.xlu0 %v4511_v39, %s4217_s28  ;;  %v1065_v39 = vpop.permute.xlu1 %1064 }
 0x608   :  { %v1070_v48 = vsel %vm915_vm4, %v1065_v39, 0 }
 0x60d   :  { %v3840_v37 = vpop.eup %3839 }
 0x60e   :  { %v906_v42 = vmul.f32 %v3840_v37, %v3832_v18 }
 0x672   :  { %v895_v35 = vpop.xlane.xlu0 %894 }
 0x673   :  { %3841 = vrcp.f32 %v895_v35 }
 0x674   :  { %3843 = vrcp.f32 %v898_v34 }
 0x67a   :  { %v901_v36 = vpop.xlane.xlu0 %900 }
 0x67b   :  { %3845 = vrcp.f32 %v901_v36 }
 0x67e   :  { %v963_v38 = vpop.permute.xlu0 %962 }
 0x67f   :  { %v968_v40 = vsel %vm915_vm4, %v963_v38, 0  ;;  %v3699_v38 = vld [vmem:[#allocation13 + $0x70] ss:$8 sps:$4 sm:$0xff]  }
 0x680   :  { %v3842_v41 = vpop.eup %3841  ;;  %3471 = vmatpush3.bf16.msra.mxu1 %v968_v40  ;;  %v3701_v40 = vld [vmem:[#allocation13 + $0x74] ss:$8 sps:$4 sm:$0xff]  }
 0x681   :  { %v907_v43 = vmul.f32 %v3842_v41, %v3836_v29  ;;  %3482 = vmatprep.subr.bf16.mxu1 %v4241_v1  ;;  %v3844_v47 = vpop.eup %3843  ;;  %v3144_v29 = vld [vmem:[#allocation9] ss:$0 sm:$0xff] }
 0x682   :  { %v908_v50 = vmul.f32 %v3844_v47, %v3834_v21  ;;  %v3704_v47 = vld [vmem:[#allocation13 + $0x64] ss:$8 sps:$4 sm:$0xff]  }
 0x683   :  { %v910_v44 = vpack.c.bf16 %v907_v43, %v906_v42 }
 0x685   :  { %3467 = vmatmul.mubr.msk.bf16.vlgmr.msra.gmra.mxu0 %vm865_vm5, %v910_v44  ;;  %v960_v46 = vrot.slane %v910_v44, 4 }
 0x686   :  { %3477 = vmatpush3.bf16.msra.mxu0 %v1020_v45  ;;  %3478 = vmatprep.mubr.msk.bf16.mxu0 %vm4242_vm0, %v4241_v1 }
 0x687   :  { %3473 = vmatmul.mubr.msk.bf16.vlgmr.msra.gmra.mxu1 %vm865_vm5, %v960_v46  ;;  %3488 = vmatprep.subr.bf16.mxu0 %v4241_v1 }
 0x688   :  { %v3846_v49 = vpop.eup %3845  ;;  %3483 = vmatpush3.bf16.msra.mxu1 %v1070_v48  ;;  %3484 = vmatprep.mubr.msk.bf16.mxu1 %vm4242_vm0, %v4241_v1  ;;  %v3702_v48 = vld [vmem:[#allocation13 + $0x60] ss:$8 sps:$4 sm:$0xff]  }
 0x689   :  { %v909_v51 = vmul.f32 %v3846_v49, %v3838_v31  ;;  %1381 = vmatprep.subr.bf16.mxu1 %v3701_v40  ;;  %v3705_v49 = vld [vmem:[#allocation13 + $0x50] ss:$8 sps:$4 sm:$0xff]  }
 0x68b   :  { %v911_v52 = vpack.c.bf16 %v909_v51, %v908_v50  ;;  %v3708_v50 = vld [vmem:[#allocation13 + $0x40] ss:$8 sps:$4 sm:$0xff]   ;;  %v3710_v51 = vld [vmem:[#allocation13 + $0x44] ss:$8 sps:$4 sm:$0xff]  }
 0x68d   :  { %3479 = vmatmul.mubr.msk.bf16.vlgmr.msra.gmra.mxu0 %vm865_vm5, %v911_v52  ;;  %v1063_v53 = vrot.slane %v911_v52, 4  ;;  %v3713_v52 = vld [vmem:[#allocation13 + $0x34] ss:$8 sps:$4 sm:$0xff]  }
 0x68e   :  { %3504 = vmatprep.mubr.msk.bf16.mxu0 %vm4242_vm0, %v4241_v1  ;;  %3489 = vmatpush3.bf16.msra.mxu0 %v3691_v54  ;;  %v3716_v54 = vld [vmem:[#allocation13 + $0x24] ss:$8 sps:$4 sm:$0xff]  }
 0x68f   :  { %3485 = vmatmul.mubr.msk.bf16.vlgmr.msra.gmra.mxu1 %vm865_vm5, %v1063_v53  ;;  %3490 = vmatprep.subr.bf16.mxu0 %v4241_v1  ;;  %v3711_v53 = vld [vmem:[#allocation13 + $0x30] ss:$8 sps:$4 sm:$0xff]  }
 0x690   :  { %1413 = vmatprep.mubr.bf16.mxu1 %v4240_v0  ;;  %1382 = vmatpush1.bf16.msra.mxu1 %v3699_v38 }
 0x691   :  { %1383 = vmatprep.subr.bf16.mxu1 %v3704_v47 }
 0x692   :  { %3491 = vmatpush3.bf16.msra.mxu0 %v3692_v55  ;;  %v3714_v55 = vld [vmem:[#allocation13 + $0x20] ss:$8 sps:$4 sm:$0xff]  }
 0x693   :  { %3492 = vmatprep.subr.bf16.mxu0 %v4241_v1 }
 0x694   :  { %1384 = vmatpush1.bf16.msra.mxu1 %v3702_v48 }
 0x696   :  { %3493 = vmatpush3.bf16.msra.mxu0 %v3693_v56  ;;  %v3719_v56 = vld [vmem:[#allocation13 + $0x14] ss:$8 sps:$4 sm:$0xff]  }
 0x697   :  { %3494 = vmatprep.subr.bf16.mxu0 %v4241_v1 }
 0x69a   :  { %3495 = vmatpush3.bf16.msra.mxu0 %v3694_v57  ;;  %v3717_v57 = vld [vmem:[#allocation13 + $0x10] ss:$8 sps:$4 sm:$0xff]  }
 0x69b   :  { %3496 = vmatprep.subr.bf16.mxu0 %v4241_v1 }
 0x69e   :  { %3497 = vmatpush3.bf16.msra.mxu0 %v3695_v58  ;;  %v3722_v58 = vld [vmem:[#allocation13 + $0x4] ss:$8 sps:$4 sm:$0xff]  }
 0x69f   :  { %3498 = vmatprep.subr.bf16.mxu0 %v4241_v1 }
 0x6a2   :  { %3499 = vmatpush3.bf16.msra.mxu0 %v3696_v59  ;;  %v3720_v59 = vld [vmem:[#allocation13] ss:$8 sps:$4 sm:$0xff]  }
 0x6a3   :  { %3500 = vmatprep.subr.bf16.mxu0 %v4241_v1 }
 0x6a6   :  { %3501 = vmatpush3.bf16.msra.mxu0 %v3697_v60 }
 0x6a7   :  { %3502 = vmatprep.subr.bf16.mxu0 %v4241_v1 }
 0x6aa   :  { %3503 = vmatpush3.bf16.msra.mxu0 %v3698_v62 }
 0x745   :  { %v953_v61 = vpop.f32.mrf.mxu0 }
 0x747   :  { %v3468_v63 = vpop.f32.mrf.mxu0  ;;  %v1004_v2 = vpop.f32.mrf.mxu1 }
 0x749   :  { %v956_v3 = vpop.f32.mrf.mxu0  ;;  %v3474_v4 = vpop.f32.mrf.mxu1 }
 0x74b   :  { %v3469_v5 = vpop.f32.mrf.mxu0  ;;  %v1007_v6 = vpop.f32.mrf.mxu1 }
 0x74c   :  { %v3153_v6 = vld [vmem:[#allocation10] ss:$0 sm:$0xff] }
 0x74d   :  { %v3475_v7 = vpop.f32.mrf.mxu1  ;;  %v1056_v9 = vpop.f32.mrf.mxu0 }
 0x74f   :  { %v3480_v12 = vpop.f32.mrf.mxu0  ;;  %v1106_v15 = vpop.f32.mrf.mxu1 }
 0x750   :  { %v3645_v16 = vpack.i.bf16 %v1106_v15, %v1004_v2  ;;  %v3154_v15 = vld [vmem:[#allocation12] ss:$0 sm:$0xff] }
 0x751   :  { %v1059_v17 = vpop.f32.mrf.mxu0  ;;  %v3486_v18 = vpop.f32.mrf.mxu1 }
 0x752   :  { %3646 = vrot.lane.b32.xlu0 %v3645_v16, %s4217_s28 }
 0x753   :  { %v3481_v19 = vpop.f32.mrf.mxu0  ;;  %v1109_v21 = vpop.f32.mrf.mxu1 }
 0x754   :  { %v3723_v21 = vld [vmem:[#allocation16 + $0x78] sm:$0xff]  }
 0x755   :  { %v3487_v22 = vpop.f32.mrf.mxu1  ;;  %3321 = vmatprep.subr.bf16.mxu0 %v3723_v21 }
 0x756   :  { %v3724_v22 = vld [vmem:[#allocation16 + $0x38] sm:$0xff]  }
 0x7c4   :  { %v3647_v23 = vpop.permute.xlu0 %3646 }
 0x7c5   :  { %v3649_v8 = vunpack.i.h.bf16 %v3647_v23  ;;  %v3648_v24 = vunpack.i.l.bf16 %v3647_v23  ;;  %v3725_v23 = vld [vmem:[#allocation16 + $0x70] sm:$0xff]  }
 0x7c7   :  { %v1014_v25 = vsel %vm311_vm3, %v953_v61, %v3648_v24  ;;  %v1116_v27 = vsel %vm311_vm3, %v1056_v9, %v3649_v8  ;;  %v3726_v8 = vld [vmem:[#allocation16 + $0x30] sm:$0xff]   ;;  %v3727_v24 = vld [vmem:[#allocation16 + $0x68] sm:$0xff]  }
 0x7c8   :  { %v1117_v28 = vpack.c.bf16 %v1116_v27, %v1014_v25  ;;  %v3728_v25 = vld [vmem:[#allocation16 + $0x28] sm:$0xff]   ;;  %v3729_v27 = vld [vmem:[#allocation16 + $0x60] sm:$0xff]  }
 0x7ca   :  { %3505 = vmatmul.mubr.bf16.vlgmr.msra.gmra.mxu0 %v1117_v28  ;;  %v3730_v28 = vld [vmem:[#allocation16 + $0x20] sm:$0xff]  }
 0x7cb   :  { %3322 = vmatpush3.bf16.msra.mxu0 %v3724_v22 }
 0x7cc   :  { %3323 = vmatprep.subr.bf16.mxu0 %v3725_v23 }
 0x7cf   :  { %3324 = vmatpush3.bf16.msra.mxu0 %v3726_v8 }
 0x7d0   :  { %3325 = vmatprep.subr.bf16.mxu0 %v3727_v24 }
 0x7d3   :  { %3326 = vmatpush3.bf16.msra.mxu0 %v3728_v25 }
 0x7d4   :  { %3327 = vmatprep.subr.bf16.mxu0 %v3729_v27 }
 0x7d7   :  { %3328 = vmatpush3.bf16.msra.mxu0 %v3730_v28 }
 0x88a   :  { %v1223_v30 = vpop.f32.mrf.mxu0 }
 0x88b   :  { %v1224_v31 = vadd.f32 %v3144_v29, %v1223_v30  ;;  %v3732_v30 = vld [vmem:[#allocation16 + $0x18] sm:$0xff]  }
 0x88c   :  { %v3506_v32 = vpop.f32.mrf.mxu0 }
 0x88d   :  { %v1230_v33 = vadd.f32 %v1224_v31, %v4478_v10  ;;  %v3733_v31 = vld [vmem:[#allocation16 + $0x50] sm:$0xff]  }
 0x88e   :  { %v1226_v34 = vpop.f32.mrf.mxu0  ;;  %v3734_v32 = vld [vmem:[#allocation16 + $0x10] sm:$0xff]  }
 0x88f   :  { %v1227_v35 = vadd.f32 %v3144_v29, %v1226_v34  ;;  %1234 = vadd.xlane.f32.xlu0 %v1230_v33  ;;  %v3731_v29 = vld [vmem:[#allocation16 + $0x58] sm:$0xff]   ;;  %v3736_v34 = vld [vmem:[#allocation16 + $0x8] sm:$0xff]  }
 0x890   :  { %v3507_v36 = vpop.f32.mrf.mxu0  ;;  %3329 = vmatprep.subr.bf16.mxu0 %v3731_v29 }
 0x891   :  { %v1231_v37 = vadd.f32 %v1227_v35, %v4480_v11  ;;  %v3707_v11 = vld [vmem:[#allocation13 + $0x54] ss:$8 sps:$4 sm:$0xff]   ;;  %3330 = vmatpush3.bf16.msra.mxu0 %v3732_v30  ;;  %v3737_v35 = vld [vmem:[#allocation16 + $0x40] sm:$0xff]  }
 0x892   :  { %1385 = vmatprep.subr.bf16.mxu1 %v3707_v11  ;;  %3331 = vmatprep.subr.bf16.mxu0 %v3733_v31  ;;  %v3738_v36 = vld [vmem:[#allocation16] sm:$0xff]  }
 0x893   :  { %1236 = vadd.xlane.f32.xlu1 %v1231_v37  ;;  %1386 = vmatpush1.bf16.msra.mxu1 %v3705_v49  ;;  %v3171_v31 = vld [vmem:[#allocation18] ss:$0 sm:$0xff] }
 0x894   :  { %1387 = vmatprep.subr.bf16.mxu1 %v3710_v51 }
 0x895   :  { %3332 = vmatpush3.bf16.msra.mxu0 %v3734_v32 }
 0x897   :  { %1388 = vmatpush1.bf16.msra.mxu1 %v3708_v50 }
 0x898   :  { %1389 = vmatprep.subr.bf16.mxu1 %v3713_v52 }
 0x89b   :  { %1390 = vmatpush1.bf16.msra.mxu1 %v3711_v53 }
 0x89c   :  { %1391 = vmatprep.subr.bf16.mxu1 %v3716_v54 }
 0x89f   :  { %1392 = vmatpush1.bf16.msra.mxu1 %v3714_v55 }
 0x8a0   :  { %1393 = vmatprep.subr.bf16.mxu1 %v3719_v56 }
 0x8a3   :  { %1394 = vmatpush1.bf16.msra.mxu1 %v3717_v57 }
 0x8a4   :  { %1395 = vmatprep.subr.bf16.mxu1 %v3722_v58 }
 0x8a7   :  { %1396 = vmatpush1.bf16.msra.mxu1 %v3720_v59 }
 0x918   :  { %v1235_v41 = vpop.xlane.xlu0 %1234 }
 0x919   :  { %v1238_v42 = vmul.f32 0.0078125, %v1235_v41 }
 0x91b   :  { %v1240_v43 = vsub.f32 %v1230_v33, %v1238_v42  ;;  %v3735_v33 = vld [vmem:[#allocation16 + $0x48] sm:$0xff]  }
 0x91c   :  { %v1237_v44 = vpop.xlane.xlu1 %1236  ;;  %3333 = vmatprep.subr.bf16.mxu0 %v3735_v33 }
 0x91d   :  { %v1239_v39 = vmul.f32 0.0078125, %v1237_v44  ;;  %v1242_v45 = vmul.f32 %v1240_v43, %v1240_v43  ;;  %3334 = vmatpush3.bf16.msra.mxu0 %v3736_v34 }
 0x91e   :  { %3335 = vmatprep.subr.bf16.mxu0 %v3737_v35 }
 0x91f   :  { %v1241_v46 = vsub.f32 %v1231_v37, %v1239_v39  ;;  %1244 = vadd.xlane.f32.xlu0 %v1242_v45  ;;  %v1289_v37 = vld [vmem:[#allocation15] sm:$0x3] }
 0x920   :  { %v1294_v38 = vrot.slane %v1289_v37, %v4498_v20  ;;  %v1298_v40 = vrot.slane %v1289_v37, %v4492_v14 }
 0x921   :  { %v1243_v10 = vmul.f32 %v1241_v46, %v1241_v46  ;;  %3336 = vmatpush3.bf16.msra.mxu0 %v3738_v36 }
 0x922   :  { %3508 = vmatprep.subr.bf16.mxu0 %v4241_v1 }
 0x923   :  { %1246 = vadd.xlane.f32.xlu0 %v1243_v10 }
 0x9a8   :  { %v1245_v60 = vpop.xlane.xlu0 %1244 }
 0x9a9   :  { %v1248_v61 = vmul.f32 0.0078125, %v1245_v60 }
 0x9ab   :  { %v1250_v62 = vadd.f32 1e-12, %v1248_v61 }
 0x9ac   :  { %v1247_v63 = vpop.xlane.xlu0 %1246 }
 0x9ad   :  { %3847 = vrsqrt.f32 %v1250_v62  ;;  %v1249_v2 = vmul.f32 0.0078125, %v1247_v63 }
 0x9af   :  { %v1251_v3 = vadd.f32 1e-12, %v1249_v2 }
 0x9b1   :  { %3849 = vrsqrt.f32 %v1251_v3 }
 0x9ba   :  { %v3848_v4 = vpop.eup %3847 }
 0x9bb   :  { %v1254_v5 = vmul.f32 %v3848_v4, %v1240_v43 }
 0x9bd   :  { %v1262_v12 = vmul.f32 %v3153_v6, %v1254_v5 }
 0x9be   :  { %v3850_v7 = vpop.eup %3849 }
 0x9bf   :  { %v1255_v9 = vmul.f32 %v3850_v7, %v1241_v46  ;;  %v4574_v17 = vadd.f32 %v3154_v15, %v1262_v12 }
 0x9c1   :  { %v1263_v16 = vmul.f32 %v3153_v6, %v1255_v9 }
 0x9c3   :  { %v4576_v18 = vadd.f32 %v3154_v15, %v1263_v16 }
 0x9c5   :  { %v1272_v19 = vpack.c.bf16 %v4576_v18, %v4574_v17 }
 0x9c7   :  { %1414 = vmatmul.mubr.bf16.vlgmr.msra.gmra.mxu1 %v1272_v19 }
 0x9c8   :  { %1892 = vmatprep.mubr.bf16.mxu1 %v4240_v0 }
 0xa87   :  { %v1415_v41 = vpop.f32.mrf.mxu1 }
 0xa88   :  { %v1416_v42 = vadd.f32 %v1415_v41, %v1294_v38 }
 0xa89   :  { %v1417_v43 = vpop.f32.mrf.mxu1 }
 0xa8a   :  { %v1424_v44 = vmul.f32 %v1416_v42, %v1416_v42  ;;  %v1418_v39 = vadd.f32 %v1417_v43, %v1298_v40  ;;  %v3741_v43 = vld [vmem:[#allocation6 + $0x16c] ss:$12 sps:$4 sm:$0xff]  }
 0xa8b   :  { %v1419_v45 = vpop.f32.mrf.mxu1  ;;  %1860 = vmatprep.subr.bf16.mxu1 %v3741_v43 }
 0xa8c   :  { %v1428_v46 = vmul.f32 %v1424_v44, %v1416_v42  ;;  %v1425_v10 = vmul.f32 %v1418_v39, %v1418_v39  ;;  %v1420_v47 = vadd.f32 %v1419_v45, %v1294_v38  ;;  %v3742_v44 = vld [vmem:[#allocation6 + $0x170] ss:$12 sps:$4 sm:$0xff]  }
 0xa8d   :  { %v1421_v48 = vpop.f32.mrf.mxu1 }
 0xa8e   :  { %v1432_v11 = vmul.f32 0.044715, %v1428_v46  ;;  %v1429_v49 = vmul.f32 %v1425_v10, %v1418_v39  ;;  %v1426_v50 = vmul.f32 %v1420_v47, %v1420_v47  ;;  %v1422_v51 = vadd.f32 %v1421_v48, %v1298_v40 }
 0xa90   :  { %v1436_v52 = vadd.f32 %v1432_v11, %v1416_v42  ;;  %v1433_v53 = vmul.f32 0.044715, %v1429_v49  ;;  %v1430_v54 = vmul.f32 %v1426_v50, %v1420_v47  ;;  %v1427_v55 = vmul.f32 %v1422_v51, %v1422_v51  ;;  %v3745_v11 = vld [vmem:[#allocation6 + $0x154] ss:$12 sps:$4 sm:$0xff]   ;;  %v3743_v49 = vld [vmem:[#allocation6 + $0x150] ss:$12 sps:$4 sm:$0xff]  }
 0xa91   :  { %v3746_v50 = vld [vmem:[#allocation6 + $0x158] ss:$12 sps:$4 sm:$0xff]  }
 0xa92   :  { %v1440_v56 = vmul.f32 0.7978846, %v1436_v52  ;;  %v1437_v57 = vadd.f32 %v1433_v53, %v1418_v39  ;;  %v1434_v58 = vmul.f32 0.044715, %v1430_v54  ;;  %v1431_v59 = vmul.f32 %v1427_v55, %v1422_v51  ;;  %v3747_v52 = vld [vmem:[#allocation6 + $0x138] ss:$12 sps:$4 sm:$0xff]  }
 0xa93   :  { %v3750_v53 = vld [vmem:[#allocation6 + $0x140] ss:$12 sps:$4 sm:$0xff]   ;;  %v3753_v55 = vld [vmem:[#allocation6 + $0x124] ss:$12 sps:$4 sm:$0xff]  }
 0xa94   :  { %v1441_v60 = vmul.f32 0.7978846, %v1437_v57  ;;  %v1438_v61 = vadd.f32 %v1434_v58, %v1420_v47  ;;  %v1435_v62 = vmul.f32 0.044715, %v1431_v59  ;;  %3851 = vtanh.f32 %v1440_v56  ;;  %v3751_v54 = vld [vmem:[#allocation6 + $0x120] ss:$12 sps:$4 sm:$0xff]  }
 0xa95   :  { %v3754_v56 = vld [vmem:[#allocation6 + $0x128] ss:$12 sps:$4 sm:$0xff]   ;;  %v3757_v57 = vld [vmem:[#allocation6 + $0x10c] ss:$12 sps:$4 sm:$0xff]   ;;  %v3758_v59 = vld [vmem:[#allocation6 + $0x110] ss:$12 sps:$4 sm:$0xff]  }
 0xa96   :  { %3853 = vtanh.f32 %v1441_v60  ;;  %v1442_v63 = vmul.f32 0.7978846, %v1438_v61  ;;  %v1439_v2 = vadd.f32 %v1435_v62, %v1422_v51  ;;  %v3755_v58 = vld [vmem:[#allocation6 + $0x108] ss:$12 sps:$4 sm:$0xff]   ;;  %v3759_v61 = vld [vmem:[#allocation6 + $0xf0] ss:$12 sps:$4 sm:$0xff]  }
 0xa97   :  { %v3761_v60 = vld [vmem:[#allocation6 + $0xf4] ss:$12 sps:$4 sm:$0xff]   ;;  %v3762_v62 = vld [vmem:[#allocation6 + $0xf8] ss:$12 sps:$4 sm:$0xff]  }
 0xa98   :  { %3855 = vtanh.f32 %v1442_v63  ;;  %v1443_v3 = vmul.f32 0.7978846, %v1439_v2  ;;  %v3765_v63 = vld [vmem:[#allocation6 + $0xdc] ss:$12 sps:$4 sm:$0xff]   ;;  %v3763_v2 = vld [vmem:[#allocation6 + $0xd8] ss:$12 sps:$4 sm:$0xff]  }
 0xa9a   :  { %3857 = vtanh.f32 %v1443_v3  ;;  %v3766_v3 = vld [vmem:[#allocation6 + $0xe0] ss:$12 sps:$4 sm:$0xff]  }
 0xaa1   :  { %v3852_v4 = vpop.eup %3851 }
 0xaa2   :  { %v1448_v9 = vadd.f32 1.0, %v3852_v4  ;;  %v3769_v4 = vld [vmem:[#allocation6 + $0xc4] ss:$12 sps:$4 sm:$0xff]  }
 0xaa3   :  { %v3854_v5 = vpop.eup %3853 }
 0xaa4   :  { %v1449_v6 = vadd.f32 1.0, %v3854_v5  ;;  %v1452_v22 = vmul.f32 0.5, %v1448_v9  ;;  %v3767_v5 = vld [vmem:[#allocation6 + $0xc0] ss:$12 sps:$4 sm:$0xff]  }
 0xaa5   :  { %v3856_v7 = vpop.eup %3855 }
 0xaa6   :  { %v1450_v12 = vadd.f32 1.0, %v3856_v7  ;;  %v1453_v21 = vmul.f32 0.5, %v1449_v6  ;;  %v1456_v27 = vmul.f32 %v1452_v22, %v1416_v42  ;;  %v3739_v42 = vld [vmem:[#allocation6 + $0x168] ss:$12 sps:$4 sm:$0xff]  }
 0xaa7   :  { %v3858_v15 = vpop.eup %3857  ;;  %1861 = vmatpush1.bf16.msra.mxu1 %v3739_v42  ;;  %v3770_v6 = vld [vmem:[#allocation6 + $0xc8] ss:$12 sps:$4 sm:$0xff]  }
 0xaa8   :  { %v1454_v16 = vmul.f32 0.5, %v1450_v12  ;;  %v1451_v19 = vadd.f32 1.0, %v3858_v15  ;;  %v1457_v24 = vmul.f32 %v1453_v21, %v1418_v39  ;;  %1862 = vmatprep.subr.bf16.mxu1 %v3745_v11 }
 0xaaa   :  { %v1455_v23 = vmul.f32 0.5, %v1451_v19  ;;  %v1458_v8 = vmul.f32 %v1454_v16, %v1420_v47 }
 0xaab   :  { %1863 = vmatpush1.bf16.msra.mxu1 %v3743_v49 }
 0xaac   :  { %v1459_v25 = vmul.f32 %v1455_v23, %v1422_v51  ;;  %v1460_v29 = vpack.c.bf16 %v1458_v8, %v1456_v27  ;;  %v3749_v51 = vld [vmem:[#allocation6 + $0x13c] ss:$12 sps:$4 sm:$0xff]   ;;  %v3188_v23 = vld [vmem:[#allocation19] ss:$0 sm:$0xff]  ;;  %v3189_v27 = vld [vmem:[#allocation21] ss:$0 sm:$0xff] }
 0xaad   :  { %1864 = vmatprep.subr.bf16.mxu1 %v3749_v51 }
 0xaae   :  { %v1461_v28 = vpack.c.bf16 %v1459_v25, %v1457_v24 }
 0xaaf   :  { %1865 = vmatpush1.bf16.msra.mxu1 %v3747_v52 }
 0xab0   :  { %1629 = vmatprep.mubr.bf16.mxu0 %v1461_v28  ;;  %1866 = vmatprep.subr.bf16.mxu1 %v3753_v55 }
 0xab1   :  { %1630 = vmatmul.mubr.bf16.vlgmr.msra.gmra.mxu0 %v1460_v29 }
 0xab2   :  { %3524 = vmatprep.mubr.msk.bf16.mxu0 %vm4242_vm0, %v4241_v1  ;;  %3509 = vmatpush3.bf16.msra.mxu0 %v3742_v44 }
 0xab3   :  { %3510 = vmatprep.subr.bf16.mxu0 %v4241_v1  ;;  %1867 = vmatpush1.bf16.msra.mxu1 %v3751_v54 }
 0xab4   :  { %1868 = vmatprep.subr.bf16.mxu1 %v3757_v57 }
 0xab6   :  { %3511 = vmatpush3.bf16.msra.mxu0 %v3746_v50 }
 0xab7   :  { %3512 = vmatprep.subr.bf16.mxu0 %v4241_v1  ;;  %1869 = vmatpush1.bf16.msra.mxu1 %v3755_v58 }
 0xab8   :  { %1870 = vmatprep.subr.bf16.mxu1 %v3761_v60 }
 0xaba   :  { %3513 = vmatpush3.bf16.msra.mxu0 %v3750_v53 }
 0xabb   :  { %3514 = vmatprep.subr.bf16.mxu0 %v4241_v1  ;;  %1871 = vmatpush1.bf16.msra.mxu1 %v3759_v61 }
 0xabc   :  { %1872 = vmatprep.subr.bf16.mxu1 %v3765_v63 }
 0xabe   :  { %3515 = vmatpush3.bf16.msra.mxu0 %v3754_v56 }
 0xabf   :  { %3516 = vmatprep.subr.bf16.mxu0 %v4241_v1  ;;  %1873 = vmatpush1.bf16.msra.mxu1 %v3763_v2 }
 0xac0   :  { %1874 = vmatprep.subr.bf16.mxu1 %v3769_v4 }
 0xac2   :  { %3517 = vmatpush3.bf16.msra.mxu0 %v3758_v59 }
 0xac3   :  { %3518 = vmatprep.subr.bf16.mxu0 %v4241_v1  ;;  %1875 = vmatpush1.bf16.msra.mxu1 %v3767_v5 }
 0xac4   :  { %3528 = vmatprep.subr.bf16.mxu1 %v4241_v1 }
 0xac6   :  { %3519 = vmatpush3.bf16.msra.mxu0 %v3762_v62 }
 0xac7   :  { %3520 = vmatprep.subr.bf16.mxu0 %v4241_v1 }
 0xaca   :  { %3521 = vmatpush3.bf16.msra.mxu0 %v3766_v3 }
 0xacb   :  { %3522 = vmatprep.subr.bf16.mxu0 %v4241_v1 }
 0xace   :  { %3523 = vmatpush3.bf16.msra.mxu0 %v3770_v6 }
 0xacf   :  { %3552 = vmatprep.subr.bf16.mxu0 %v4241_v1 }
 0xb71   :  { %v3337_v30 = vpop.f32.mrf.mxu0 }
 0xb73   :  { %v3338_v32 = vpop.f32.mrf.mxu0 }
 0xb74   :  { %v3339_v33 = vadd.f32 %v3338_v32, %v3337_v30  ;;  %v3190_v32 = vld [vmem:[%s4723_s7 + $0x3] sm:$0x7] }
 0xb75   :  { %v3340_v34 = vpop.f32.mrf.mxu0 }
 0xb76   :  { %v1632_v35 = vadd.f32 %v3339_v33, %v3171_v31 }
 0xb77   :  { %v3341_v36 = vpop.f32.mrf.mxu0 }
 0xb78   :  { %v3342_v37 = vadd.f32 %v3341_v36, %v3340_v34  ;;  %v1638_v38 = vadd.f32 %v1632_v35, %v4574_v17  ;;  %v1720_v35 = vrot.slane %v3190_v32, %v4498_v20  ;;  %v1728_v36 = vrot.slane %v3190_v32, %v449_v26 }
 0xb7a   :  { %v1635_v40 = vadd.f32 %v3342_v37, %v3171_v31  ;;  %1642 = vadd.xlane.f32.xlu1 %v1638_v38 }
 0xb7c   :  { %v1639_v41 = vadd.f32 %v1635_v40, %v4576_v18  ;;  %v1724_v40 = vrot.slane %v3190_v32, %v4492_v14 }
 0xb7e   :  { %1644 = vadd.xlane.f32.xlu0 %v1639_v41 }
 0xc03   :  { %v1643_v39 = vpop.xlane.xlu1 %1642 }
 0xc04   :  { %v1646_v45 = vmul.f32 0.0078125, %v1643_v39 }
 0xc06   :  { %v4589_v46 = vsub.f32 %v1638_v38, %v1646_v45 }
 0xc07   :  { %v1645_v10 = vpop.xlane.xlu0 %1644 }
 0xc08   :  { %v1647_v47 = vmul.f32 0.0078125, %v1645_v10  ;;  %v1650_v17 = vmul.f32 %v4589_v46, %v4589_v46 }
 0xc0a   :  { %v4593_v48 = vsub.f32 %v1639_v41, %v1647_v47  ;;  %1652 = vadd.xlane.f32.xlu1 %v1650_v17 }
 0xc0c   :  { %v1651_v18 = vmul.f32 %v4593_v48, %v4593_v48 }
 0xc0e   :  { %1654 = vadd.xlane.f32.xlu0 %v1651_v18 }
 0xc93   :  { %v1653_v7 = vpop.xlane.xlu1 %1652 }
 0xc94   :  { %v1656_v9 = vmul.f32 0.0078125, %v1653_v7 }
 0xc96   :  { %v1658_v12 = vadd.f32 1e-12, %v1656_v9 }
 0xc97   :  { %v1655_v15 = vpop.xlane.xlu0 %1654 }
 0xc98   :  { %3859 = vrsqrt.f32 %v1658_v12  ;;  %v1657_v16 = vmul.f32 0.0078125, %v1655_v15 }
 0xc9a   :  { %v1659_v19 = vadd.f32 1e-12, %v1657_v16 }
 0xc9c   :  { %3861 = vrsqrt.f32 %v1659_v19 }
 0xca5   :  { %v3860_v21 = vpop.eup %3859 }
 0xca6   :  { %v1662_v22 = vmul.f32 %v3860_v21, %v4589_v46 }
 0xca8   :  { %v1670_v25 = vmul.f32 %v3188_v23, %v1662_v22 }
 0xca9   :  { %v3862_v8 = vpop.eup %3861 }
 0xcaa   :  { %v1663_v24 = vmul.f32 %v3862_v8, %v4593_v48  ;;  %v4607_v29 = vadd.f32 %v3189_v27, %v1670_v25 }
 0xcac   :  { %v1671_v28 = vmul.f32 %v3188_v23, %v1663_v24 }
 0xcae   :  { %v4609_v30 = vadd.f32 %v3189_v27, %v1671_v28 }
 0xcb0   :  { %v1680_v31 = vpack.c.bf16 %v4609_v30, %v4607_v29 }
 0xcb2   :  { %1893 = vmatmul.mubr.bf16.vlgmr.msra.gmra.mxu1 %v1680_v31  ;;  %3525 = vmatmul.mubr.bf16.vlgmr.msra.gmra.mxu0 %v1680_v31 }
 0xcb3   :  { %3530 = vmatprep.mubr.msk.bf16.mxu1 %vm4242_vm0, %v4241_v1  ;;  %3554 = vmatprep.mubr.msk.bf16.mxu0 %vm4242_vm0, %v4241_v1 }
 0xd72   :  { %v1894_v33 = vpop.f32.mrf.mxu1  ;;  %v1937_v34 = vpop.f32.mrf.mxu0 }
 0xd73   :  { %v1895_v43 = vadd.f32 %v1894_v33, %v1720_v35  ;;  %v1938_v44 = vadd.f32 %v1937_v34, %v1728_v36 }
 0xd74   :  { %v1896_v37 = vpop.f32.mrf.mxu1  ;;  %v3526_v38 = vpop.f32.mrf.mxu0 }
 0xd75   :  { %v1897_v47 = vadd.f32 %v1896_v37, %v1724_v40 }
 0xd76   :  { %v1898_v41 = vpop.f32.mrf.mxu1  ;;  %v1940_v42 = vpop.f32.mrf.mxu0 }
 0xd77   :  { %v1899_v39 = vadd.f32 %v1898_v41, %v1720_v35  ;;  %v1941_v45 = vadd.f32 %v1940_v42, %v1728_v36 }
 0xd78   :  { %v1900_v46 = vpop.f32.mrf.mxu1  ;;  %v3527_v10 = vpop.f32.mrf.mxu0 }
 0xd79   :  { %v1944_v17 = vpack.c.bf16 %v1899_v39, %v1895_v43  ;;  %v4624_v48 = vpack.c.bf16 %v1941_v45, %v1938_v44  ;;  %v1901_v18 = vadd.f32 %v1900_v46, %v1724_v40 }
 0xd7b   :  { %v1945_v11 = vpack.c.bf16 %v1901_v18, %v1897_v47  ;;  %1994 = vrot.lane.b32.xlu0 %v1944_v17, %s4217_s28  ;;  %v2193_v13 = vsel %vm915_vm4, %v4624_v48, 0  ;;  %v2045_v50 = vrot.slane %v1944_v17, 4  ;;  %v2291_v46 = vrot.slane %v4624_v48, 4 }
 0xd7c   :  { %3553 = vmatpush3.bf16.msra.mxu0 %v2193_v13 }
 0xd7d   :  { %1997 = vrot.lane.b32.xlu1 %v1945_v11, %s4217_s28  ;;  %v1951_v26 = vsel %vm311_vm3, %v1945_v11, 0  ;;  %3564 = vmatprep.subr.bf16.mxu0 %v4241_v1  ;;  %v2046_v49 = vrot.slane %v1945_v11, 4 }
 0xd7e   :  { %3529 = vmatpush3.bf16.xpose.msra.mxu1 %v1951_v26 }
 0xd7f   :  { %3534 = vmatprep.subr.bf16.mxu1 %v4241_v1  ;;  %v2051_v54 = vsel %vm311_vm3, %v2046_v49, 0 }
 0xd81   :  { %2095 = vrot.lane.b32.xlu1 %v2046_v49, %s4217_s28 }
 0xd85   :  { %2093 = vrot.lane.b32.xlu1 %v2045_v50, %s4217_s28  ;;  %3531 = vmatmul.mubr.msk.bf16.vlgmr.msra.gmra.mxu1 %vm311_vm3, %v1944_v17 }
 0xd86   :  { %3536 = vmatprep.mubr.msk.bf16.mxu1 %vm4242_vm0, %v4241_v1 }
 0xded   :  { %v1995_v53 = vpop.permute.xlu0 %1994 }
 0xdef   :  { %v1998_v51 = vpop.permute.xlu1 %1997 }
 0xdf0   :  { %v2003_v52 = vsel %vm311_vm3, %v1998_v51, 0 }
 0xdf1   :  { %3535 = vmatpush3.bf16.xpose.msra.mxu1 %v2003_v52  ;;  %v2296_v52 = vsel %vm915_vm4, %v2291_v46, 0 }
 0xdf2   :  { %3540 = vmatprep.subr.bf16.mxu1 %v4241_v1 }
 0xdf3   :  { %v2096_v55 = vpop.permute.xlu1 %2095 }
 0xdf4   :  { %v2101_v56 = vsel %vm311_vm3, %v2096_v55, 0 }
 0xdf7   :  { %v2094_v57 = vpop.permute.xlu1 %2093 }
 0xdf8   :  { %3537 = vmatmul.mubr.msk.bf16.vlgmr.msra.gmra.mxu1 %vm311_vm3, %v1995_v53 }
 0xdf9   :  { %3541 = vmatpush3.bf16.xpose.msra.mxu1 %v2051_v54  ;;  %3542 = vmatprep.mubr.msk.bf16.mxu1 %vm4242_vm0, %v4241_v1 }
 0xdfa   :  { %3546 = vmatprep.subr.bf16.mxu1 %v4241_v1 }
 0xe00   :  { %3543 = vmatmul.mubr.msk.bf16.vlgmr.msra.gmra.mxu1 %vm311_vm3, %v2045_v50 }
 0xe01   :  { %3547 = vmatpush3.bf16.xpose.msra.mxu1 %v2101_v56  ;;  %3548 = vmatprep.mubr.msk.bf16.mxu1 %vm4242_vm0, %v4241_v1 }
 0xe02   :  { %3558 = vmatprep.subr.bf16.mxu1 %v4241_v1 }
 0xe08   :  { %3549 = vmatmul.mubr.msk.bf16.vlgmr.msra.gmra.mxu1 %vm311_vm3, %v2094_v57 }
 0xe09   :  { %3560 = vmatprep.mubr.msk.bf16.mxu1 %vm4242_vm0, %v4241_v1 }
 0xe45   :  { %v1987_v58 = vpop.f32.mrf.mxu1 }
 0xe46   :  { %v2143_v59 = vsel %vm865_vm5, %v1987_v58, -inf }
 0xe47   :  { %2144 = vmax.xlane.f32.xlu0 %v2143_v59  ;;  %v3532_v60 = vpop.f32.mrf.mxu1 }
 0xe49   :  { %v1990_v61 = vpop.f32.mrf.mxu1 }
 0xe4b   :  { %v3533_v62 = vpop.f32.mrf.mxu1 }
 0xe4c   :  { %v3771_v62 = vld [vmem:[#allocation7 + $0x78] sm:$0xff]  }
 0xeb8   :  { %v2039_v63 = vpop.f32.mrf.mxu1 }
 0xeb9   :  { %v2146_v2 = vsel %vm865_vm5, %v2039_v63, -inf }
 0xeba   :  { %2147 = vmax.xlane.f32.xlu1 %v2146_v2  ;;  %v3538_v3 = vpop.f32.mrf.mxu1  ;;  %v3773_v2 = vld [vmem:[#allocation7 + $0x68] sm:$0xff]  }
 0xebb   :  { %v3774_v3 = vld [vmem:[#allocation7 + $0x60] sm:$0xff]  }
 0xebc   :  { %v2042_v4 = vpop.f32.mrf.mxu1 }
 0xebd   :  { %v3775_v4 = vld [vmem:[#allocation7 + $0x58] sm:$0xff]  }
 0xebe   :  { %v3539_v5 = vpop.f32.mrf.mxu1 }
 0xebf   :  { %v3776_v5 = vld [vmem:[#allocation7 + $0x50] sm:$0xff]  }
 0xec0   :  { %v2087_v6 = vpop.f32.mrf.mxu1 }
 0xec1   :  { %v2149_v7 = vsel %vm865_vm5, %v2087_v6, -inf }
 0xec2   :  { %2150 = vmax.xlane.f32.xlu0 %v2149_v7  ;;  %v3544_v9 = vpop.f32.mrf.mxu1 }
 0xec4   :  { %v2090_v12 = vpop.f32.mrf.mxu1 }
 0xec6   :  { %v3545_v15 = vpop.f32.mrf.mxu1 }
 0xec8   :  { %v2137_v16 = vpop.f32.mrf.mxu1 }
 0xec9   :  { %v2152_v19 = vsel %vm865_vm5, %v2137_v16, -inf }
 0xeca   :  { %2153 = vmax.xlane.f32.xlu0 %v2152_v19  ;;  %v3550_v21 = vpop.f32.mrf.mxu1 }
 0xecc   :  { %v2140_v22 = vpop.f32.mrf.mxu1 }
 0xecd   :  { %v3778_v22 = vld [vmem:[#allocation7 + $0x40] sm:$0xff]  }
 0xece   :  { %v3551_v23 = vpop.f32.mrf.mxu1 }
 0xed0   :  { %v2145_v8 = vpop.xlane.xlu0 %2144 }
 0xed1   :  { %v2155_v24 = vsub.f32 %v1987_v58, %v2145_v8 }
 0xed3   :  { %v2159_v25 = vmul.f32 1.442695, %v2155_v24 }
 0xed5   :  { %3863 = vpow2.f32 %v2159_v25 }
 0xee2   :  { %v3864_v27 = vpop.eup %3863 }
 0xee3   :  { %v2167_v28 = vsel %vm865_vm5, %v3864_v27, 0.0 }
 0xee4   :  { %2168 = vadd.xlane.f32.xlu1 %v2167_v28 }
 0xf43   :  { %v2148_v31 = vpop.xlane.xlu1 %2147 }
 0xf44   :  { %v2156_v32 = vsub.f32 %v2039_v63, %v2148_v31  ;;  %v3772_v63 = vld [vmem:[#allocation7 + $0x70] sm:$0xff]  }
 0xf46   :  { %v2161_v33 = vmul.f32 1.442695, %v2156_v32 }
 0xf48   :  { %3865 = vpow2.f32 %v2161_v33 }
 0xf4b   :  { %v2151_v34 = vpop.xlane.xlu0 %2150 }
 0xf4c   :  { %v2157_v35 = vsub.f32 %v2087_v6, %v2151_v34 }
 0xf4e   :  { %v2163_v36 = vmul.f32 1.442695, %v2157_v35 }
 0xf50   :  { %3867 = vpow2.f32 %v2163_v36 }
 0xf53   :  { %v2154_v37 = vpop.xlane.xlu0 %2153 }
 0xf54   :  { %v2158_v38 = vsub.f32 %v2137_v16, %v2154_v37 }
 0xf55   :  { %v3866_v40 = vpop.eup %3865 }
 0xf56   :  { %v2165_v41 = vmul.f32 1.442695, %v2158_v38  ;;  %v2170_v42 = vsel %vm865_vm5, %v3866_v40, 0.0 }
 0xf57   :  { %2171 = vadd.xlane.f32.xlu0 %v2170_v42 }
 0xf58   :  { %3869 = vpow2.f32 %v2165_v41  ;;  %v3223_v41 = vld [vmem:[#allocation9 + $0x1] ss:$0 sm:$0xff] }
 0xf5d   :  { %v3868_v43 = vpop.eup %3867 }
 0xf5e   :  { %v2173_v44 = vsel %vm865_vm5, %v3868_v43, 0.0 }
 0xf5f   :  { %2174 = vadd.xlane.f32.xlu1 %v2173_v44 }
 0xf65   :  { %v3870_v39 = vpop.eup %3869 }
 0xf66   :  { %v2176_v45 = vsel %vm865_vm5, %v3870_v39, 0.0 }
 0xf67   :  { %2177 = vadd.xlane.f32.xlu0 %v2176_v45 }
 0xf6d   :  { %v2169_v10 = vpop.xlane.xlu1 %2168 }
 0xf6e   :  { %3871 = vrcp.f32 %v2169_v10 }
 0xf70   :  { %2238 = vrot.lane.b32.xlu1 %v4624_v48, %s4217_s28 }
 0xf7b   :  { %v3872_v18 = vpop.eup %3871 }
 0xf7c   :  { %v2183_v49 = vmul.f32 %v3872_v18, %v3864_v27  ;;  %v3781_v18 = vld [vmem:[#allocation13 + $0xf4] ss:$8 sps:$4 sm:$0xff]  }
 0xf7d   :  { %2340 = vrot.lane.b32.xlu0 %v2291_v46, %s4217_s28 }
 0xfe0   :  { %v2172_v47 = vpop.xlane.xlu0 %2171 }
 0xfe1   :  { %3873 = vrcp.f32 %v2172_v47 }
 0xfe8   :  { %v2175_v17 = vpop.xlane.xlu1 %2174 }
 0xfe9   :  { %3875 = vrcp.f32 %v2175_v17  ;;  %v3779_v17 = vld [vmem:[#allocation13 + $0xf0] ss:$8 sps:$4 sm:$0xff]  }
 0xfec   :  { %v2239_v11 = vpop.permute.xlu1 %2238 }
 0xfed   :  { %v2244_v13 = vsel %vm915_vm4, %v2239_v11, 0 }
 0xfee   :  { %v3874_v26 = vpop.eup %3873  ;;  %3559 = vmatpush3.bf16.msra.mxu1 %v2244_v13 }
 0xfef   :  { %v2184_v50 = vmul.f32 %v3874_v26, %v3866_v40  ;;  %3570 = vmatprep.subr.bf16.mxu1 %v4241_v1 }
 0xff0   :  { %v2178_v51 = vpop.xlane.xlu0 %2177 }
 0xff1   :  { %3877 = vrcp.f32 %v2178_v51  ;;  %v2187_v48 = vpack.c.bf16 %v2184_v50, %v2183_v49 }
 0xff3   :  { %3555 = vmatmul.mubr.msk.bf16.vlgmr.msra.gmra.mxu0 %vm865_vm5, %v2187_v48  ;;  %v2236_v53 = vrot.slane %v2187_v48, 4 }
 0xff4   :  { %3565 = vmatpush3.bf16.msra.mxu0 %v2296_v52  ;;  %v2341_v54 = vpop.permute.xlu0 %2340  ;;  %3566 = vmatprep.mubr.msk.bf16.mxu0 %vm4242_vm0, %v4241_v1  ;;  %v3784_v52 = vld [vmem:[#allocation13 + $0xe4] ss:$8 sps:$4 sm:$0xff]  }
 0xff5   :  { %v2346_v55 = vsel %vm915_vm4, %v2341_v54, 0  ;;  %3561 = vmatmul.mubr.msk.bf16.vlgmr.msra.gmra.mxu1 %vm865_vm5, %v2236_v53  ;;  %3576 = vmatprep.subr.bf16.mxu0 %v4241_v1  ;;  %v3782_v53 = vld [vmem:[#allocation13 + $0xe0] ss:$8 sps:$4 sm:$0xff]   ;;  %v3785_v54 = vld [vmem:[#allocation13 + $0xd0] ss:$8 sps:$4 sm:$0xff]  }
 0xff6   :  { %3571 = vmatpush3.bf16.msra.mxu1 %v2346_v55  ;;  %3572 = vmatprep.mubr.msk.bf16.mxu1 %vm4242_vm0, %v4241_v1  ;;  %v3876_v56 = vpop.eup %3875  ;;  %v3788_v55 = vld [vmem:[#allocation13 + $0xc0] ss:$8 sps:$4 sm:$0xff]  }
 0xff7   :  { %v2185_v58 = vmul.f32 %v3876_v56, %v3868_v43  ;;  %2663 = vmatprep.subr.bf16.mxu1 %v3781_v18  ;;  %v3790_v56 = vld [vmem:[#allocation13 + $0xc4] ss:$8 sps:$4 sm:$0xff]  }
 0xffe   :  { %v3878_v57 = vpop.eup %3877 }
 0xfff   :  { %v2186_v59 = vmul.f32 %v3878_v57, %v3870_v39  ;;  %v3793_v57 = vld [vmem:[#allocation13 + $0xb4] ss:$8 sps:$4 sm:$0xff]  }
0x1001   :  { %v2188_v60 = vpack.c.bf16 %v2186_v59, %v2185_v58  ;;  %v3791_v58 = vld [vmem:[#allocation13 + $0xb0] ss:$8 sps:$4 sm:$0xff]   ;;  %v3796_v59 = vld [vmem:[#allocation13 + $0xa4] ss:$8 sps:$4 sm:$0xff]  }
0x1003   :  { %3567 = vmatmul.mubr.msk.bf16.vlgmr.msra.gmra.mxu0 %vm865_vm5, %v2188_v60  ;;  %v2339_v61 = vrot.slane %v2188_v60, 4  ;;  %v3794_v60 = vld [vmem:[#allocation13 + $0xa0] ss:$8 sps:$4 sm:$0xff]  }
0x1004   :  { %3592 = vmatprep.mubr.msk.bf16.mxu0 %vm4242_vm0, %v4241_v1  ;;  %3577 = vmatpush3.bf16.msra.mxu0 %v3771_v62  ;;  %v3797_v62 = vld [vmem:[#allocation13 + $0x90] ss:$8 sps:$4 sm:$0xff]  }
0x1005   :  { %3573 = vmatmul.mubr.msk.bf16.vlgmr.msra.gmra.mxu1 %vm865_vm5, %v2339_v61  ;;  %3578 = vmatprep.subr.bf16.mxu0 %v4241_v1  ;;  %v3799_v61 = vld [vmem:[#allocation13 + $0x94] ss:$8 sps:$4 sm:$0xff]  }
0x1006   :  { %2695 = vmatprep.mubr.bf16.mxu1 %v4240_v0  ;;  %v3777_v0 = vld [vmem:[#allocation7 + $0x48] sm:$0xff]   ;;  %2664 = vmatpush1.bf16.msra.mxu1 %v3779_v17 }
0x1007   :  { %2665 = vmatprep.subr.bf16.mxu1 %v3784_v52 }
0x1008   :  { %3579 = vmatpush3.bf16.msra.mxu0 %v3772_v63  ;;  %v3802_v63 = vld [vmem:[#allocation13 + $0x84] ss:$8 sps:$4 sm:$0xff]  }
0x1009   :  { %3580 = vmatprep.subr.bf16.mxu0 %v4241_v1 }
0x100a   :  { %2666 = vmatpush1.bf16.msra.mxu1 %v3782_v53 }
0x100c   :  { %3581 = vmatpush3.bf16.msra.mxu0 %v3773_v2  ;;  %v3800_v2 = vld [vmem:[#allocation13 + $0x80] ss:$8 sps:$4 sm:$0xff]  }
0x100d   :  { %3582 = vmatprep.subr.bf16.mxu0 %v4241_v1 }
0x1010   :  { %3583 = vmatpush3.bf16.msra.mxu0 %v3774_v3 }
0x1011   :  { %3584 = vmatprep.subr.bf16.mxu0 %v4241_v1 }
0x1014   :  { %3585 = vmatpush3.bf16.msra.mxu0 %v3775_v4 }
0x1015   :  { %3586 = vmatprep.subr.bf16.mxu0 %v4241_v1 }
0x1018   :  { %3587 = vmatpush3.bf16.msra.mxu0 %v3776_v5 }
0x1019   :  { %3588 = vmatprep.subr.bf16.mxu0 %v4241_v1 }
0x101c   :  { %3589 = vmatpush3.bf16.msra.mxu0 %v3777_v0 }
0x101d   :  { %3590 = vmatprep.subr.bf16.mxu0 %v4241_v1 }
0x1020   :  { %3591 = vmatpush3.bf16.msra.mxu0 %v3778_v22  ;;  %v3233_v22 = vld [vmem:[#allocation12 + $0x1] ss:$0 sm:$0xff] }
0x10b3   :  { %v2229_v6 = vpop.f32.mrf.mxu0 }
0x10b5   :  { %v3556_v7 = vpop.f32.mrf.mxu0  ;;  %v2280_v9 = vpop.f32.mrf.mxu1 }
0x10b7   :  { %v2232_v12 = vpop.f32.mrf.mxu0  ;;  %v3562_v15 = vpop.f32.mrf.mxu1 }
0x10b8   :  { %v3232_v15 = vld [vmem:[#allocation10 + $0x1] ss:$0 sm:$0xff] }
0x10b9   :  { %v3557_v16 = vpop.f32.mrf.mxu0  ;;  %v2283_v19 = vpop.f32.mrf.mxu1 }
0x10bb   :  { %v3563_v21 = vpop.f32.mrf.mxu1 }
0x10c3   :  { %v2332_v23 = vpop.f32.mrf.mxu0 }
0x10c5   :  { %v3568_v8 = vpop.f32.mrf.mxu0  ;;  %v2382_v24 = vpop.f32.mrf.mxu1 }
0x10c6   :  { %v3650_v25 = vpack.i.bf16 %v2382_v24, %v2280_v9 }
0x10c7   :  { %v2335_v27 = vpop.f32.mrf.mxu0  ;;  %v3574_v28 = vpop.f32.mrf.mxu1 }
0x10c8   :  { %3651 = vrot.lane.b32.xlu1 %v3650_v25, %s4217_s28  ;;  %v3803_v27 = vld [vmem:[#allocation16 + $0xf8] sm:$0xff]  }
0x10c9   :  { %v3569_v31 = vpop.f32.mrf.mxu0  ;;  %v2385_v32 = vpop.f32.mrf.mxu1  ;;  %v3804_v28 = vld [vmem:[#allocation16 + $0xb8] sm:$0xff]   ;;  %3377 = vmatprep.subr.bf16.mxu0 %v3803_v27 }
0x10ca   :  { %v3805_v31 = vld [vmem:[#allocation16 + $0xf0] sm:$0xff]  }
0x10cb   :  { %v3575_v33 = vpop.f32.mrf.mxu1  ;;  %v3806_v32 = vld [vmem:[#allocation16 + $0xb0] sm:$0xff]  }
0x10cc   :  { %v3807_v33 = vld [vmem:[#allocation16 + $0xe8] sm:$0xff]  }
0x113a   :  { %v3652_v34 = vpop.permute.xlu1 %3651 }
0x113b   :  { %v3654_v35 = vunpack.i.h.bf16 %v3652_v34  ;;  %v3653_v36 = vunpack.i.l.bf16 %v3652_v34  ;;  %v3808_v34 = vld [vmem:[#allocation16 + $0xa8] sm:$0xff]  }
0x113d   :  { %v2392_v37 = vsel %vm311_vm3, %v2332_v23, %v3654_v35  ;;  %v2290_v38 = vsel %vm311_vm3, %v2229_v6, %v3653_v36  ;;  %v3809_v35 = vld [vmem:[#allocation16 + $0xe0] sm:$0xff]  }
0x113e   :  { %v2393_v40 = vpack.c.bf16 %v2392_v37, %v2290_v38  ;;  %v3810_v36 = vld [vmem:[#allocation16 + $0xa0] sm:$0xff]   ;;  %v3811_v37 = vld [vmem:[#allocation16 + $0xd8] sm:$0xff]  }
0x113f   :  { %v3812_v38 = vld [vmem:[#allocation16 + $0x98] sm:$0xff]  }
0x1140   :  { %3593 = vmatmul.mubr.bf16.vlgmr.msra.gmra.mxu0 %v2393_v40  ;;  %v3813_v40 = vld [vmem:[#allocation16 + $0xd0] sm:$0xff]  }
0x1141   :  { %3378 = vmatpush3.bf16.msra.mxu0 %v3804_v28 }
0x1142   :  { %3379 = vmatprep.subr.bf16.mxu0 %v3805_v31 }
0x1145   :  { %3380 = vmatpush3.bf16.msra.mxu0 %v3806_v32 }
0x1146   :  { %3381 = vmatprep.subr.bf16.mxu0 %v3807_v33 }
0x1149   :  { %3382 = vmatpush3.bf16.msra.mxu0 %v3808_v34  ;;  %v3250_v34 = vld [vmem:[#allocation18 + $0x1] ss:$0 sm:$0xff] }
0x114a   :  { %3383 = vmatprep.subr.bf16.mxu0 %v3809_v35 }
0x114d   :  { %3384 = vmatpush3.bf16.msra.mxu0 %v3810_v36 }
0x114e   :  { %3385 = vmatprep.subr.bf16.mxu0 %v3811_v37 }
0x1151   :  { %3386 = vmatpush3.bf16.msra.mxu0 %v3812_v38 }
0x1152   :  { %3387 = vmatprep.subr.bf16.mxu0 %v3813_v40 }
0x1200   :  { %v2501_v42 = vpop.f32.mrf.mxu0 }
0x1201   :  { %v2502_v43 = vadd.f32 %v3223_v41, %v2501_v42  ;;  %v3815_v42 = vld [vmem:[#allocation16 + $0xc8] sm:$0xff]  }
0x1202   :  { %v3594_v44 = vpop.f32.mrf.mxu0 }
0x1203   :  { %v2508_v39 = vadd.f32 %v2502_v43, %v4607_v29  ;;  %v3816_v43 = vld [vmem:[#allocation16 + $0x88] sm:$0xff]   ;;  %v3817_v44 = vld [vmem:[#allocation16 + $0xc0] sm:$0xff]  }
0x1204   :  { %v2504_v45 = vpop.f32.mrf.mxu0 }
0x1205   :  { %v2505_v46 = vadd.f32 %v3223_v41, %v2504_v45  ;;  %2514 = vadd.xlane.f32.xlu1 %v2508_v39  ;;  %v3814_v41 = vld [vmem:[#allocation16 + $0x90] sm:$0xff]   ;;  %v2571_v45 = vld [vmem:[#allocation15 + $0x2] sm:$0x3] }
0x1206   :  { %v3595_v10 = vpop.f32.mrf.mxu0  ;;  %3388 = vmatpush3.bf16.msra.mxu0 %v3814_v41 }
0x1207   :  { %v2509_v47 = vadd.f32 %v2505_v46, %v4609_v30  ;;  %v3787_v30 = vld [vmem:[#allocation13 + $0xd4] ss:$8 sps:$4 sm:$0xff]   ;;  %3389 = vmatprep.subr.bf16.mxu0 %v3815_v42  ;;  %v2576_v46 = vrot.slane %v2571_v45, %v4498_v20  ;;  %v2580_v10 = vrot.slane %v2571_v45, %v4492_v14 }
0x1208   :  { %2667 = vmatprep.subr.bf16.mxu1 %v3787_v30 }
0x1209   :  { %2516 = vadd.xlane.f32.xlu0 %v2509_v47  ;;  %2668 = vmatpush1.bf16.msra.mxu1 %v3785_v54 }
0x120a   :  { %2669 = vmatprep.subr.bf16.mxu1 %v3790_v56  ;;  %3390 = vmatpush3.bf16.msra.mxu0 %v3816_v43 }
0x120b   :  { %3391 = vmatprep.subr.bf16.mxu0 %v3817_v44 }
0x120d   :  { %2670 = vmatpush1.bf16.msra.mxu1 %v3788_v55 }
0x120e   :  { %2671 = vmatprep.subr.bf16.mxu1 %v3793_v57 }
0x1211   :  { %2672 = vmatpush1.bf16.msra.mxu1 %v3791_v58 }
0x1212   :  { %2673 = vmatprep.subr.bf16.mxu1 %v3796_v59 }
0x1215   :  { %2674 = vmatpush1.bf16.msra.mxu1 %v3794_v60 }
0x1216   :  { %2675 = vmatprep.subr.bf16.mxu1 %v3799_v61 }
0x1219   :  { %2676 = vmatpush1.bf16.msra.mxu1 %v3797_v62 }
0x121a   :  { %2677 = vmatprep.subr.bf16.mxu1 %v3802_v63 }
0x121d   :  { %2678 = vmatpush1.bf16.msra.mxu1 %v3800_v2 }
0x121e   :  { %3596 = vmatprep.subr.bf16.mxu1 %v4241_v1 }
0x128e   :  { %v2515_v11 = vpop.xlane.xlu1 %2514 }
0x128f   :  { %v2518_v13 = vmul.f32 0.0078125, %v2515_v11 }
0x1291   :  { %v2520_v26 = vsub.f32 %v2508_v39, %v2518_v13  ;;  %v3818_v39 = vld [vmem:[#allocation16 + $0x80] sm:$0xff]  }
0x1292   :  { %v2517_v49 = vpop.xlane.xlu0 %2516  ;;  %3392 = vmatpush3.bf16.msra.mxu0 %v3818_v39 }
0x1293   :  { %v2519_v50 = vmul.f32 0.0078125, %v2517_v49  ;;  %v2522_v51 = vmul.f32 %v2520_v26, %v2520_v26 }
0x1295   :  { %v2521_v48 = vsub.f32 %v2509_v47, %v2519_v50  ;;  %2524 = vadd.xlane.f32.xlu0 %v2522_v51 }
0x1297   :  { %v2523_v29 = vmul.f32 %v2521_v48, %v2521_v48 }
0x1299   :  { %2526 = vadd.xlane.f32.xlu1 %v2523_v29 }
0x131e   :  { %v2525_v3 = vpop.xlane.xlu0 %2524 }
0x131f   :  { %v2528_v4 = vmul.f32 0.0078125, %v2525_v3 }
0x1321   :  { %v2530_v5 = vadd.f32 1e-12, %v2528_v4 }
0x1322   :  { %v2527_v0 = vpop.xlane.xlu1 %2526 }
0x1323   :  { %3879 = vrsqrt.f32 %v2530_v5  ;;  %v2529_v6 = vmul.f32 0.0078125, %v2527_v0 }
0x1325   :  { %v2531_v7 = vadd.f32 1e-12, %v2529_v6 }
0x1327   :  { %3881 = vrsqrt.f32 %v2531_v7 }
0x1330   :  { %v3880_v9 = vpop.eup %3879 }
0x1331   :  { %v2534_v12 = vmul.f32 %v3880_v9, %v2520_v26 }
0x1333   :  { %v2542_v21 = vmul.f32 %v3232_v15, %v2534_v12 }
0x1334   :  { %v3882_v16 = vpop.eup %3881 }
0x1335   :  { %v2535_v19 = vmul.f32 %v3882_v16, %v2521_v48  ;;  %v4694_v8 = vadd.f32 %v3233_v22, %v2542_v21 }
0x1337   :  { %v2543_v23 = vmul.f32 %v3232_v15, %v2535_v19 }
0x1339   :  { %v4696_v24 = vadd.f32 %v3233_v22, %v2543_v23 }
0x133b   :  { %v2552_v25 = vpack.c.bf16 %v4696_v24, %v4694_v8 }
0x133d   :  { %2696 = vmatmul.mubr.bf16.vlgmr.msra.gmra.mxu1 %v2552_v25 }
0x133e   :  { %3612 = vmatprep.mubr.msk.bf16.mxu1 %vm4242_vm0, %v4241_v1 }
0x13fd   :  { %v2697_v47 = vpop.f32.mrf.mxu1 }
0x13fe   :  { %v2698_v17 = vadd.f32 %v2697_v47, %v2576_v46 }
0x13ff   :  { %v2699_v18 = vpop.f32.mrf.mxu1 }
0x1400   :  { %v2706_v11 = vmul.f32 %v2698_v17, %v2698_v17  ;;  %v2700_v13 = vadd.f32 %v2699_v18, %v2580_v10 }
0x1401   :  { %v2701_v26 = vpop.f32.mrf.mxu1 }
0x1402   :  { %v2710_v49 = vmul.f32 %v2706_v11, %v2698_v17  ;;  %v2707_v50 = vmul.f32 %v2700_v13, %v2700_v13  ;;  %v2702_v51 = vadd.f32 %v2701_v26, %v2576_v46  ;;  %v3822_v26 = vld [vmem:[#allocation22 + $0x20] sm:$0xff]  }
0x1403   :  { %v2703_v48 = vpop.f32.mrf.mxu1 }
0x1404   :  { %v2714_v29 = vmul.f32 0.044715, %v2710_v49  ;;  %v2711_v52 = vmul.f32 %v2707_v50, %v2700_v13  ;;  %v2708_v53 = vmul.f32 %v2702_v51, %v2702_v51  ;;  %v2704_v30 = vadd.f32 %v2703_v48, %v2580_v10  ;;  %v3823_v49 = vld [vmem:[#allocation22 + $0x18] sm:$0xff]   ;;  %v3824_v50 = vld [vmem:[#allocation22 + $0x10] sm:$0xff]   ;;  %v3826_v48 = vld [vmem:[#allocation22] sm:$0xff]  }
0x1406   :  { %v2718_v54 = vadd.f32 %v2714_v29, %v2698_v17  ;;  %v2715_v55 = vmul.f32 0.044715, %v2711_v52  ;;  %v2712_v56 = vmul.f32 %v2708_v53, %v2702_v51  ;;  %v2709_v20 = vmul.f32 %v2704_v30, %v2704_v30 }
0x1408   :  { %v2722_v57 = vmul.f32 0.7978846, %v2718_v54  ;;  %v2719_v14 = vadd.f32 %v2715_v55, %v2700_v13  ;;  %v2716_v58 = vmul.f32 0.044715, %v2712_v56  ;;  %v2713_v59 = vmul.f32 %v2709_v20, %v2704_v30 }
0x140a   :  { %v2723_v60 = vmul.f32 0.7978846, %v2719_v14  ;;  %v2720_v61 = vadd.f32 %v2716_v58, %v2702_v51  ;;  %v2717_v62 = vmul.f32 0.044715, %v2713_v59  ;;  %3883 = vtanh.f32 %v2722_v57  ;;  %v3267_v14 = vld [vmem:[#allocation19 + $0x1] ss:$0 sm:$0xff] }
0x140c   :  { %3885 = vtanh.f32 %v2723_v60  ;;  %v2724_v63 = vmul.f32 0.7978846, %v2720_v61  ;;  %v2721_v2 = vadd.f32 %v2717_v62, %v2704_v30  ;;  %v3268_v61 = vld [vmem:[#allocation21 + $0x1] ss:$0 sm:$0xff] }
0x140e   :  { %3887 = vtanh.f32 %v2724_v63  ;;  %v2725_v3 = vmul.f32 0.7978846, %v2721_v2 }
0x1410   :  { %3889 = vtanh.f32 %v2725_v3 }
0x1417   :  { %v3884_v4 = vpop.eup %3883 }
0x1418   :  { %v2730_v7 = vadd.f32 1.0, %v3884_v4  ;;  %v3269_v4 = vld [vmem:[#allocation24] ss:$0 sm:$0xff] }
0x1419   :  { %v3886_v5 = vpop.eup %3885 }
0x141a   :  { %v2731_v0 = vadd.f32 1.0, %v3886_v5  ;;  %v2734_v21 = vmul.f32 0.5, %v2730_v7 }
0x141b   :  { %v3888_v6 = vpop.eup %3887 }
0x141c   :  { %v2732_v9 = vadd.f32 1.0, %v3888_v6  ;;  %v2735_v19 = vmul.f32 0.5, %v2731_v0  ;;  %v2738_v28 = vmul.f32 %v2734_v21, %v2698_v17 }
0x141d   :  { %v3890_v12 = vpop.eup %3889 }
0x141e   :  { %v2736_v15 = vmul.f32 0.5, %v2732_v9  ;;  %v2733_v16 = vadd.f32 1.0, %v3890_v12  ;;  %v2739_v25 = vmul.f32 %v2735_v19, %v2700_v13  ;;  %v3819_v13 = vld [vmem:[#allocation22 + $0x38] sm:$0xff]  }
0x141f   :  { %3597 = vmatpush3.bf16.msra.mxu1 %v3819_v13 }
0x1420   :  { %v2737_v22 = vmul.f32 0.5, %v2733_v16  ;;  %v2740_v23 = vmul.f32 %v2736_v15, %v2702_v51  ;;  %3598 = vmatprep.subr.bf16.mxu1 %v4241_v1  ;;  %v3825_v51 = vld [vmem:[#allocation22 + $0x8] sm:$0xff]  }
0x1422   :  { %v2741_v27 = vmul.f32 %v2737_v22, %v2704_v30  ;;  %v2742_v32 = vpack.c.bf16 %v2740_v23, %v2738_v28 }
0x1424   :  { %v2743_v31 = vpack.c.bf16 %v2741_v27, %v2739_v25 }
0x1426   :  { %2913 = vmatprep.mubr.bf16.mxu0 %v2743_v31 }
0x1427   :  { %2914 = vmatmul.mubr.bf16.vlgmr.msra.gmra.mxu0 %v2742_v32 }
0x14e7   :  { %v3393_v33 = vpop.f32.mrf.mxu0 }
0x14e9   :  { %v3394_v35 = vpop.f32.mrf.mxu0 }
0x14ea   :  { %v3395_v36 = vadd.f32 %v3394_v35, %v3393_v33 }
0x14eb   :  { %v3396_v37 = vpop.f32.mrf.mxu0 }
0x14ec   :  { %v2916_v38 = vadd.f32 %v3395_v36, %v3250_v34 }
0x14ed   :  { %v3397_v40 = vpop.f32.mrf.mxu0 }
0x14ee   :  { %v3398_v41 = vadd.f32 %v3397_v40, %v3396_v37  ;;  %v2922_v42 = vadd.f32 %v2916_v38, %v4694_v8  ;;  %v3820_v8 = vld [vmem:[#allocation22 + $0x30] sm:$0xff]  }
0x14ef   :  { %3599 = vmatpush3.bf16.msra.mxu1 %v3820_v8 }
0x14f0   :  { %v2919_v43 = vadd.f32 %v3398_v41, %v3250_v34  ;;  %2928 = vadd.xlane.f32.xlu1 %v2922_v42  ;;  %3600 = vmatprep.subr.bf16.mxu1 %v4241_v1 }
0x14f2   :  { %v2923_v44 = vadd.f32 %v2919_v43, %v4696_v24  ;;  %v3821_v24 = vld [vmem:[#allocation22 + $0x28] sm:$0xff]  }
0x14f3   :  { %3601 = vmatpush3.bf16.msra.mxu1 %v3821_v24 }
0x14f4   :  { %2930 = vadd.xlane.f32.xlu0 %v2923_v44  ;;  %3602 = vmatprep.subr.bf16.mxu1 %v4241_v1 }
0x14f7   :  { %3603 = vmatpush3.bf16.msra.mxu1 %v3822_v26 }
0x14f8   :  { %3604 = vmatprep.subr.bf16.mxu1 %v4241_v1 }
0x14fb   :  { %3605 = vmatpush3.bf16.msra.mxu1 %v3823_v49 }
0x14fc   :  { %3606 = vmatprep.subr.bf16.mxu1 %v4241_v1 }
0x14ff   :  { %3607 = vmatpush3.bf16.msra.mxu1 %v3824_v50 }
0x1500   :  { %3608 = vmatprep.subr.bf16.mxu1 %v4241_v1 }
0x1503   :  { %3609 = vmatpush3.bf16.msra.mxu1 %v3825_v51 }
0x1504   :  { %3610 = vmatprep.subr.bf16.mxu1 %v4241_v1 }
0x1507   :  { %3611 = vmatpush3.bf16.msra.mxu1 %v3826_v48 }
0x1579   :  { %v2929_v39 = vpop.xlane.xlu1 %2928 }
0x157a   :  { %v2932_v45 = vmul.f32 0.0078125, %v2929_v39 }
0x157c   :  { %v2934_v46 = vsub.f32 %v2922_v42, %v2932_v45 }
0x157d   :  { %v2931_v10 = vpop.xlane.xlu0 %2930 }
0x157e   :  { %v2933_v47 = vmul.f32 0.0078125, %v2931_v10  ;;  %v2936_v17 = vmul.f32 %v2934_v46, %v2934_v46 }
0x1580   :  { %v2935_v18 = vsub.f32 %v2923_v44, %v2933_v47  ;;  %2938 = vadd.xlane.f32.xlu1 %v2936_v17 }
0x1582   :  { %v2937_v11 = vmul.f32 %v2935_v18, %v2935_v18 }
0x1584   :  { %2940 = vadd.xlane.f32.xlu0 %v2937_v11 }
0x1609   :  { %v2939_v29 = vpop.xlane.xlu1 %2938 }
0x160a   :  { %v2942_v52 = vmul.f32 0.0078125, %v2939_v29 }
0x160c   :  { %v2944_v53 = vadd.f32 1e-12, %v2942_v52 }
0x160d   :  { %v2941_v30 = vpop.xlane.xlu0 %2940 }
0x160e   :  { %3891 = vrsqrt.f32 %v2944_v53  ;;  %v2943_v54 = vmul.f32 0.0078125, %v2941_v30 }
0x1610   :  { %v2945_v55 = vadd.f32 1e-12, %v2943_v54 }
0x1612   :  { %3893 = vrsqrt.f32 %v2945_v55 }
0x161b   :  { %v3892_v56 = vpop.eup %3891 }
0x161c   :  { %v2948_v20 = vmul.f32 %v3892_v56, %v2934_v46 }
0x161e   :  { %v2956_v59 = vmul.f32 %v3267_v14, %v2948_v20 }
0x161f   :  { %v3894_v57 = vpop.eup %3893 }
0x1620   :  { %v2949_v58 = vmul.f32 %v3894_v57, %v2935_v18  ;;  %v2964_v1 = vadd.f32 %v3268_v61, %v2956_v59 }
0x1622   :  { %v2957_v60 = vmul.f32 %v3267_v14, %v2949_v58 }
0x1624   :  { %v2965_v62 = vadd.f32 %v3268_v61, %v2957_v60 }
0x1626   :  { %v2967_v63 = vrot.slane %v2965_v62, 7 }
0x1628   :  { %v2970_v2 = vsel %vm2969_vm6, %v2964_v1, %v2967_v63 }
0x1629   :  { %v3279_v3 = vpack.c.bf16 %v2970_v2, %v2970_v2 }
0x162b   :  { %3613 = vmatmul.mubr.msk.bf16.vlgmr.msra.gmra.mxu1 %vm3278_vm8, %v3279_v3 }
0x16eb   :  { %v3079_v5 = vpop.f32.mrf.mxu1 }
0x16ec   :  { %v3080_v0 = vadd.f32 %v3269_v4, %v3079_v5 }
0x16ed   :  { %v3614_v6 = vpop.f32.mrf.mxu1 }
0x16ee   :  { %v3281_v7 = vmul.f32 -1.442695, %v3080_v0 }
0x16ef   :  { %v3082_v9 = vpop.f32.mrf.mxu1 }
0x16f0   :  { %3895 = vpow2.f32 %v3281_v7 }
0x16f1   :  { %v3615_v12 = vpop.f32.mrf.mxu1 }
0x16fd   :  { %v3896_v15 = vpop.eup %3895 }
0x16fe   :  { %v3088_v16 = vadd.f32 1.0, %v3896_v15 }
0x1700   :  { %3897 = vrcp.f32 %v3088_v16 }
0x170d   :  { %v3898_v19 = vpop.eup %3897 }
0x170e   :  { %3091 = vst [vmem:[%s4736_s20] sm:$0xff] %v3898_v19 }
0x170f   :  { %3096 = vsyncpa [#allocation3], 1 }
0x1710   :  { %3097 = vsyncpa [#allocation5], 1 }
0x1711   :  { %3098 = vsyncpa [#allocation8], 1 }
0x1712   :  { %3099 = vsyncpa [#allocation11], 1 }
0x1713   :  { %3100 = vsyncpa [#allocation14], 1 }
0x1714   :  { %3101 = vsyncpa [#allocation17], 1 }
0x1715   :  { %3102 = vsyncpa [#allocation20], 1 }
0x1716   :  { %3103 = vsyncpa [#allocation23], 1 }

</bundles_post_ra>
